<compile_context>
chip_gen: v7x
topology: tpu7x:2x2x1
jax: 0.10.0
libtpu: 0.0.40
codegen_flags: <defaults>
</compile_context>

<pallas_src>
import functools

import jax
import jax.numpy as jnp
from jax.experimental import pallas as pl
from jax.experimental.pallas import tpu as pltpu

_BN_EPS = 1e-5


# ----------------------------------------------------------------------------
# Fused kernel: whole BasicBlock for one batch element per grid step.
# ----------------------------------------------------------------------------
def _basic_block_kernel(x_ref, w1_ref, s1_ref, b1_ref, w2_ref, s2_ref, b2_ref,
                        wsc_ref, ssc_ref, bsc_ref,
                        f1w_ref, f1b_ref, f2w_ref, f2b_ref,
                        o_ref,
                        cols1_ref, pad_ref, cols2_ref,
                        *, Ho, Wo, Cin, C, stride, has_proj):
    s = stride
    x = x_ref[...]                                        # (s*s, Ha, Wa, Cin) bf16

    # ---- conv1 im2col -------------------------------------------------------
    # Tap (dy,dx) of a stride-s conv on the padded input xp reads
    #   xp[s*i+dy, s*j+dx]  =  parity plane (dy%s, dx%s) at unstrided offset (dy//s, dx//s)
    for k in range(9):
        dy, dx = k // 3, k % 3
        win = x[(dy % s) * s + (dx % s),
                dy // s: dy // s + Ho,
                dx // s: dx // s + Wo, :]                 # (Ho, Wo, Cin) bf16
        cols1_ref[:, k * Cin:(k + 1) * Cin] = win.reshape(Ho * Wo, Cin)

    # conv1 + BN1 + ReLU  (single fat MXU matmul, K = 9*Cin, f32 accumulation)
    y1 = jnp.dot(cols1_ref[...], w1_ref[...], preferred_element_type=jnp.float32)
    y1 = jnp.maximum(y1 * s1_ref[0] + b1_ref[0], 0.0)     # (Ho*Wo, C) f32

    # ---- zero-padded conv1 output stays in VMEM -----------------------------
    pad_ref[...] = jnp.zeros_like(pad_ref)
    pad_ref[1:Ho + 1, 1:Wo + 1, :] = y1.reshape(Ho, Wo, C)

    # ---- conv2 im2col (stride 1) -------------------------------------------
    for k in range(9):
        dy, dx = k // 3, k % 3
        win2 = pad_ref[dy:dy + Ho, dx:dx + Wo, :]         # (Ho, Wo, C) f32
        cols2_ref[:, k * C:(k + 1) * C] = win2.reshape(Ho * Wo, C)

    # conv2 + BN2 (no ReLU), K = 9*C, bf16 operands / f32 accumulation
    out2 = jnp.dot(cols2_ref[...].astype(jnp.bfloat16), w2_ref[...],
                   preferred_element_type=jnp.float32)
    out2 = out2 * s2_ref[0] + b2_ref[0]                   # (Ho*Wo, C) f32

    # ---- shortcut ------------------------------------------------------------
    # x[s*i, s*j] = xp[s*i+1, s*j+1]  ->  plane (1%s, 1%s), offset 1//s
    p0 = (1 % s) * s + (1 % s)
    o0 = 1 // s
    x_sc = x[p0, o0:o0 + Ho, o0:o0 + Wo, :].reshape(Ho * Wo, Cin)
    if has_proj:
        sc = jnp.dot(x_sc, wsc_ref[...], preferred_element_type=jnp.float32)
        sc = sc * ssc_ref[0] + bsc_ref[0]
    else:
        sc = x_sc.astype(jnp.float32)                     # identity (Cin == C)

    # ---- squeeze-excite gate -------------------------------------------------
    pooled = jnp.mean(out2, axis=0, keepdims=True)        # (1, C) global avg pool
    h = jnp.dot(pooled, f1w_ref[...], preferred_element_type=jnp.float32) + f1b_ref[...]
    h = jnp.maximum(h, 0.0)                               # (1, Cr)
    gate = jax.nn.sigmoid(
        jnp.dot(h, f2w_ref[...], preferred_element_type=jnp.float32) + f2b_ref[...])

    # ---- scale, residual add, final ReLU, single HBM store -------------------
    y = jnp.maximum(out2 * gate + sc, 0.0)
    o_ref[...] = y.reshape(1, Ho, Wo, C).astype(o_ref.dtype)


# ----------------------------------------------------------------------------
# Wrapper: layout plumbing + pallas_call
# ----------------------------------------------------------------------------
def _bn_scale_shift(gamma, beta, mean, var):
    scale = gamma / jnp.sqrt(var + _BN_EPS)
    shift = beta - mean * scale
    return (scale.reshape(1, -1).astype(jnp.float32),
            shift.reshape(1, -1).astype(jnp.float32))


def basic_block_pallas(x_nhwc, p, *, in_planes, planes, stride):
    N, H, W, Cin = x_nhwc.shape
    assert Cin == in_planes
    C = planes
    Cr = C // 16
    assert Cr >= 1, "planes must be >= 16 (matches the PyTorch module's planes//16 SE)"
    s = int(stride)
    assert s in (1, 2) and H % s == 0 and W % s == 0
    Ho, Wo = H // s, W // s
    has_proj = (s != 1) or (in_planes != planes)

    # ---- input prep: pad once, fold stride into s*s parity planes (bf16) ------
    xp = jnp.pad(x_nhwc, ((0, 0), (1, 1), (1, 1), (0, 0)))
    Hp, Wp = H + 2, W + 2
    if s == 1:
        Ha, Wa = Hp, Wp
        x_planes = xp.reshape(N, 1, Ha, Wa, Cin)
    else:
        Ha, Wa = Hp // s, Wp // s
        x_planes = xp.reshape(N, Ha, s, Wa, s, Cin).transpose(0, 2, 4, 1, 3, 5)
        x_planes = x_planes.reshape(N, s * s, Ha, Wa, Cin)
    x_planes = x_planes.reshape(N * s * s, Ha, Wa, Cin).astype(jnp.bfloat16)

    # ---- weights in matmul / bf16 form; eval-mode BN folded to scale/shift ----
    w1 = p["conv1_hwio"].reshape(9 * Cin, C).astype(jnp.bfloat16)      # (9*Cin, C)
    w2 = p["conv2_hwio"].reshape(9 * C, C).astype(jnp.bfloat16)        # (9*C, C)
    s1, b1 = _bn_scale_shift(*p["bn1"])
    s2, b2 = _bn_scale_shift(*p["bn2"])
    if has_proj:
        wsc = p["sc_hwio"][0, 0].astype(jnp.bfloat16)                  # (Cin, C)
        ssc, bsc = _bn_scale_shift(*p["bn_sc"])
    else:
        wsc = jnp.zeros((Cin, C), jnp.bfloat16)                        # unused
        ssc = jnp.ones((1, C), jnp.float32)
        bsc = jnp.zeros((1, C), jnp.float32)

    kernel = functools.partial(_basic_block_kernel, Ho=Ho, Wo=Wo, Cin=Cin, C=C,
                               stride=s, has_proj=has_proj)

    flops = 2 * N * Ho * Wo * (9 * Cin * C + 9 * C * C + (Cin * C if has_proj else 0))
    flops += 4 * N * C * Cr + 10 * N * Ho * Wo * C
    bytes_accessed = (x_planes.size * 2 + w1.size * 2 + w2.size * 2 + wsc.size * 2
                      + 6 * C * 4 + (C * Cr * 2 + Cr + C) * 4
                      + N * Ho * Wo * C * 4)

    out = pl.pallas_call(
        kernel,
        out_shape=jax.ShapeDtypeStruct((N, Ho, Wo, C), jnp.float32),
        grid=(N,),
        in_specs=[
            pl.BlockSpec((s * s, Ha, Wa, Cin), lambda b: (b, 0, 0, 0)),   # x parity planes
            pl.BlockSpec((9 * Cin, C), lambda b: (0, 0)),                 # conv1 weights
            pl.BlockSpec((1, C), lambda b: (0, 0)),                       # bn1 scale
            pl.BlockSpec((1, C), lambda b: (0, 0)),                       # bn1 shift
            pl.BlockSpec((9 * C, C), lambda b: (0, 0)),                   # conv2 weights
            pl.BlockSpec((1, C), lambda b: (0, 0)),                       # bn2 scale
            pl.BlockSpec((1, C), lambda b: (0, 0)),                       # bn2 shift
            pl.BlockSpec((Cin, C), lambda b: (0, 0)),                     # shortcut weights
            pl.BlockSpec((1, C), lambda b: (0, 0)),                       # bn_sc scale
            pl.BlockSpec((1, C), lambda b: (0, 0)),                       # bn_sc shift
            pl.BlockSpec((C, Cr), lambda b: (0, 0)),                      # fc1 weights
            pl.BlockSpec((1, Cr), lambda b: (0, 0)),                      # fc1 bias
            pl.BlockSpec((Cr, C), lambda b: (0, 0)),                      # fc2 weights
            pl.BlockSpec((1, C), lambda b: (0, 0)),                       # fc2 bias
        ],
        out_specs=pl.BlockSpec((1, Ho, Wo, C), lambda b: (b, 0, 0, 0)),
        scratch_shapes=[
            pltpu.VMEM((Ho * Wo, 9 * Cin), jnp.bfloat16),                 # conv1 im2col
            pltpu.VMEM((Ho + 2, Wo + 2, C), jnp.float32),                 # padded conv1 out
            pltpu.VMEM((Ho * Wo, 9 * C), jnp.float32),                    # conv2 im2col
        ],
        compiler_params=pltpu.CompilerParams(
            dimension_semantics=("parallel",)),        # batch axis -> both v7x TCs
        cost_estimate=pl.CostEstimate(flops=int(flops),
                                      transcendentals=int(2 * N * C),
                                      bytes_accessed=int(bytes_accessed)),
    )(x_planes, w1, s1, b1, w2, s2, b2, wsc, ssc, bsc,
      p["fc1_w"], p["fc1_b"], p["fc2_w"], p["fc2_b"])
    return out


# ----------------------------------------------------------------------------
# Parameter setup (PyTorch-equivalent shapes) + pure-JAX reference
# ----------------------------------------------------------------------------
def make_params(key, in_planes, planes):
    ks = jax.random.split(key, 10)

    def bn_params(k):
        k1, k2, k3, k4 = jax.random.split(k, 4)
        gamma = 1.0 + 0.1 * jax.random.normal(k1, (planes,), jnp.float32)
        beta = 0.1 * jax.random.normal(k2, (planes,), jnp.float32)
        mean = 0.1 * jax.random.normal(k3, (planes,), jnp.float32)
        var = jax.random.uniform(k4, (planes,), jnp.float32, 0.5, 1.5)
        return gamma, beta, mean, var

    cr = planes // 16
    conv1_w = 0.1 * jax.random.normal(ks[0], (planes, in_planes, 3, 3), jnp.float32)
    conv2_w = 0.1 * jax.random.normal(ks[1], (planes, planes, 3, 3), jnp.float32)
    sc_w = 0.1 * jax.random.normal(ks[2], (planes, in_planes, 1, 1), jnp.float32)
    fc1_w = 0.1 * jax.random.normal(ks[3], (cr, planes, 1, 1), jnp.float32)
    fc1_b = 0.1 * jax.random.normal(ks[4], (cr,), jnp.float32)
    fc2_w = 0.1 * jax.random.normal(ks[5], (planes, cr, 1, 1), jnp.float32)
    fc2_b = 0.1 * jax.random.normal(ks[6], (planes,), jnp.float32)

    return {
        "conv1_hwio": jnp.transpose(conv1_w, (2, 3, 1, 0)),   # (3,3,Cin,Cout)
        "conv2_hwio": jnp.transpose(conv2_w, (2, 3, 1, 0)),
        "sc_hwio": jnp.transpose(sc_w, (2, 3, 1, 0)),         # (1,1,Cin,Cout)
        "fc1_w": fc1_w[:, :, 0, 0].T,                         # (C, C//16)
        "fc1_b": fc1_b.reshape(1, -1),
        "fc2_w": fc2_w[:, :, 0, 0].T,                         # (C//16, C)
        "fc2_b": fc2_b.reshape(1, -1),
        "bn1": bn_params(ks[7]),
        "bn2": bn_params(ks[8]),
        "bn_sc": bn_params(ks[9]),
    }


def basic_block_ref(x_nhwc, p, *, in_planes, planes, stride):
    def conv(x, w_hwio, s, pad):
        return jax.lax.conv_general_dilated(
            x, w_hwio, (s, s), [(pad, pad), (pad, pad)],
            dimension_numbers=("NHWC", "HWIO", "NHWC"))

    def bn(x, prm):
        g, b, m, v = prm
        return (x - m) / jnp.sqrt(v + _BN_EPS) * g + b

    out = jax.nn.relu(bn(conv(x_nhwc, p["conv1_hwio"], stride, 1), p["bn1"]))
    out = bn(conv(out, p["conv2_hwio"], 1, 1), p["bn2"])
    w = jnp.mean(out, axis=(1, 2), keepdims=True)
    w = jax.nn.relu(jnp.einsum("nijc,cd->nijd", w, p["fc1_w"]) + p["fc1_b"])
    w = jax.nn.sigmoid(jnp.einsum("nijc,cd->nijd", w, p["fc2_w"]) + p["fc2_b"])
    out = out * w
    if stride != 1 or in_planes != planes:
        sc = bn(conv(x_nhwc, p["sc_hwio"], stride, 0), p["bn_sc"])
    else:
        sc = x_nhwc
    return jax.nn.relu(out + sc)


if __name__ == "__main__":
    root = jax.random.PRNGKey(0)
    k_x1, k_p1, k_x2, k_p2 = jax.random.split(root, 4)

    # --- Config 1: stride-2 block with projection shortcut (main spec case) ----
    N, in_planes, planes, H, W, stride = 2, 16, 32, 16, 16, 2
    x_nchw = jax.random.normal(k_x1, (N, in_planes, H, W), jnp.float32)   # PyTorch NCHW
    x_nhwc = jnp.transpose(x_nchw, (0, 2, 3, 1))
    params = make_params(k_p1, in_planes, planes)

    out = basic_block_pallas(x_nhwc, params, in_planes=in_planes, planes=planes, stride=stride)
    out = jax.block_until_ready(out)
    ref = basic_block_ref(x_nhwc, params, in_planes=in_planes, planes=planes, stride=stride)
    assert out.shape == (N, H // stride, W // stride, planes), out.shape
    # bf16 MXU operands (per perf review) => tolerance looser than the old all-f32 path
    assert jnp.allclose(out, ref, atol=5e-2, rtol=5e-2), float(jnp.max(jnp.abs(out - ref)))

    # --- Config 2: stride-1 block with identity shortcut ------------------------
    x2 = jnp.transpose(jax.random.normal(k_x2, (N, planes, H, W), jnp.float32), (0, 2, 3, 1))
    params2 = make_params(k_p2, planes, planes)
    out2 = jax.block_until_ready(
        basic_block_pallas(x2, params2, in_planes=planes, planes=planes, stride=1))
    ref2 = basic_block_ref(x2, params2, in_planes=planes, planes=planes, stride=1)
    assert out2.shape == (N, H, W, planes), out2.shape
    assert jnp.allclose(out2, ref2, atol=5e-2, rtol=5e-2), float(jnp.max(jnp.abs(out2 - ref2)))

    print("KERNEL_OK")
</pallas_src>

<mosaic_0001>
module attributes {stable_mosaic.version = 11 : i64} {
  func.func @_basic_block_kernel(%arg0: i32, %arg1: memref<4x9x9x16xbf16, #tpu.memory_space<vmem>>, %arg2: memref<144x32xbf16, #tpu.memory_space<vmem>>, %arg3: memref<1x32xf32, #tpu.memory_space<vmem>>, %arg4: memref<1x32xf32, #tpu.memory_space<vmem>>, %arg5: memref<288x32xbf16, #tpu.memory_space<vmem>>, %arg6: memref<1x32xf32, #tpu.memory_space<vmem>>, %arg7: memref<1x32xf32, #tpu.memory_space<vmem>>, %arg8: memref<16x32xbf16, #tpu.memory_space<vmem>>, %arg9: memref<1x32xf32, #tpu.memory_space<vmem>>, %arg10: memref<1x32xf32, #tpu.memory_space<vmem>>, %arg11: memref<32x2xf32, #tpu.memory_space<vmem>>, %arg12: memref<1x2xf32, #tpu.memory_space<vmem>>, %arg13: memref<2x32xf32, #tpu.memory_space<vmem>>, %arg14: memref<1x32xf32, #tpu.memory_space<vmem>>, %arg15: memref<1x8x8x32xf32, #tpu.memory_space<vmem>>, %arg16: memref<64x144xbf16, #tpu.memory_space<vmem>>, %arg17: memref<10x10x32xf32, #tpu.memory_space<vmem>>, %arg18: memref<64x288xf32, #tpu.memory_space<vmem>>) attributes {dimension_semantics = [#tpu.dimension_semantics<parallel>], iteration_bounds = array<i64: 2>, scalar_prefetch = 0 : i64, scratch_operands = 3 : i64, tpu.core_type = #tpu.core_type<tc>, window_params = [{transform_indices = @transform_0, window_bounds = array<i64: 4, 9, 9, 16>}, {pipeline_mode = #tpu.pipeline_mode<synchronous>, transform_indices = @transform_1, window_bounds = array<i64: 144, 32>}, {pipeline_mode = #tpu.pipeline_mode<synchronous>, transform_indices = @transform_2, window_bounds = array<i64: 1, 32>}, {pipeline_mode = #tpu.pipeline_mode<synchronous>, transform_indices = @transform_3, window_bounds = array<i64: 1, 32>}, {pipeline_mode = #tpu.pipeline_mode<synchronous>, transform_indices = @transform_4, window_bounds = array<i64: 288, 32>}, {pipeline_mode = #tpu.pipeline_mode<synchronous>, transform_indices = @transform_5, window_bounds = array<i64: 1, 32>}, {pipeline_mode = #tpu.pipeline_mode<synchronous>, transform_indices = @transform_6, window_bounds = array<i64: 1, 32>}, {pipeline_mode = #tpu.pipeline_mode<synchronous>, transform_indices = @transform_7, window_bounds = array<i64: 16, 32>}, {pipeline_mode = #tpu.pipeline_mode<synchronous>, transform_indices = @transform_8, window_bounds = array<i64: 1, 32>}, {pipeline_mode = #tpu.pipeline_mode<synchronous>, transform_indices = @transform_9, window_bounds = array<i64: 1, 32>}, {pipeline_mode = #tpu.pipeline_mode<synchronous>, transform_indices = @transform_10, window_bounds = array<i64: 32, 2>}, {pipeline_mode = #tpu.pipeline_mode<synchronous>, transform_indices = @transform_11, window_bounds = array<i64: 1, 2>}, {pipeline_mode = #tpu.pipeline_mode<synchronous>, transform_indices = @transform_12, window_bounds = array<i64: 2, 32>}, {pipeline_mode = #tpu.pipeline_mode<synchronous>, transform_indices = @transform_13, window_bounds = array<i64: 1, 32>}, {transform_indices = @transform_14, window_bounds = array<i64: 1, 8, 8, 32>}]} {
    %c0 = arith.constant 0 : index
    %c0_0 = arith.constant 0 : index
    %c0_1 = arith.constant 0 : index
    %c0_2 = arith.constant 0 : index
    %0 = vector.load %arg1[%c0, %c0_0, %c0_1, %c0_2] : memref<4x9x9x16xbf16, #tpu.memory_space<vmem>>, vector<4x9x9x16xbf16>
    %1 = vector.extract_strided_slice %0 {offsets = [0, 0, 0, 0], sizes = [1, 8, 8, 16], strides = [1, 1, 1, 1]} : vector<4x9x9x16xbf16> to vector<1x8x8x16xbf16>
    %2 = vector.shape_cast %1 : vector<1x8x8x16xbf16> to vector<8x8x16xbf16>
    %3 = vector.shape_cast %2 : vector<8x8x16xbf16> to vector<64x16xbf16>
    %c0_3 = arith.constant 0 : index
    %c0_4 = arith.constant 0 : index
    %4 = vector.load %arg16[%c0_3, %c0_4] : memref<64x144xbf16, #tpu.memory_space<vmem>>, vector<64x16xbf16>
    tpu.vector_store %arg16[%c0_3, %c0_4], %3 {strides = array<i32>} : memref<64x144xbf16, #tpu.memory_space<vmem>>, vector<64x16xbf16>,
    %5 = vector.extract_strided_slice %0 {offsets = [1, 0, 0, 0], sizes = [1, 8, 8, 16], strides = [1, 1, 1, 1]} : vector<4x9x9x16xbf16> to vector<1x8x8x16xbf16>
    %6 = vector.shape_cast %5 : vector<1x8x8x16xbf16> to vector<8x8x16xbf16>
    %7 = vector.shape_cast %6 : vector<8x8x16xbf16> to vector<64x16xbf16>
    %c0_5 = arith.constant 0 : index
    %c16 = arith.constant 16 : index
    %8 = vector.load %arg16[%c0_5, %c16] : memref<64x144xbf16, #tpu.memory_space<vmem>>, vector<64x16xbf16>
    tpu.vector_store %arg16[%c0_5, %c16], %7 {strides = array<i32>} : memref<64x144xbf16, #tpu.memory_space<vmem>>, vector<64x16xbf16>,
    %9 = vector.extract_strided_slice %0 {offsets = [0, 0, 1, 0], sizes = [1, 8, 8, 16], strides = [1, 1, 1, 1]} : vector<4x9x9x16xbf16> to vector<1x8x8x16xbf16>
    %10 = vector.shape_cast %9 : vector<1x8x8x16xbf16> to vector<8x8x16xbf16>
    %11 = vector.shape_cast %10 : vector<8x8x16xbf16> to vector<64x16xbf16>
    %c0_6 = arith.constant 0 : index
    %c32 = arith.constant 32 : index
    %12 = vector.load %arg16[%c0_6, %c32] : memref<64x144xbf16, #tpu.memory_space<vmem>>, vector<64x16xbf16>
    tpu.vector_store %arg16[%c0_6, %c32], %11 {strides = array<i32>} : memref<64x144xbf16, #tpu.memory_space<vmem>>, vector<64x16xbf16>,
    %13 = vector.extract_strided_slice %0 {offsets = [2, 0, 0, 0], sizes = [1, 8, 8, 16], strides = [1, 1, 1, 1]} : vector<4x9x9x16xbf16> to vector<1x8x8x16xbf16>
    %14 = vector.shape_cast %13 : vector<1x8x8x16xbf16> to vector<8x8x16xbf16>
    %15 = vector.shape_cast %14 : vector<8x8x16xbf16> to vector<64x16xbf16>
    %c0_7 = arith.constant 0 : index
    %c48 = arith.constant 48 : index
    %16 = vector.load %arg16[%c0_7, %c48] : memref<64x144xbf16, #tpu.memory_space<vmem>>, vector<64x16xbf16>
    tpu.vector_store %arg16[%c0_7, %c48], %15 {strides = array<i32>} : memref<64x144xbf16, #tpu.memory_space<vmem>>, vector<64x16xbf16>,
    %17 = vector.extract_strided_slice %0 {offsets = [3, 0, 0, 0], sizes = [1, 8, 8, 16], strides = [1, 1, 1, 1]} : vector<4x9x9x16xbf16> to vector<1x8x8x16xbf16>
    %18 = vector.shape_cast %17 : vector<1x8x8x16xbf16> to vector<8x8x16xbf16>
    %19 = vector.shape_cast %18 : vector<8x8x16xbf16> to vector<64x16xbf16>
    %c0_8 = arith.constant 0 : index
    %c64 = arith.constant 64 : index
    %20 = vector.load %arg16[%c0_8, %c64] : memref<64x144xbf16, #tpu.memory_space<vmem>>, vector<64x16xbf16>
    tpu.vector_store %arg16[%c0_8, %c64], %19 {strides = array<i32>} : memref<64x144xbf16, #tpu.memory_space<vmem>>, vector<64x16xbf16>,
    %21 = vector.extract_strided_slice %0 {offsets = [2, 0, 1, 0], sizes = [1, 8, 8, 16], strides = [1, 1, 1, 1]} : vector<4x9x9x16xbf16> to vector<1x8x8x16xbf16>
    %22 = vector.shape_cast %21 : vector<1x8x8x16xbf16> to vector<8x8x16xbf16>
    %23 = vector.shape_cast %22 : vector<8x8x16xbf16> to vector<64x16xbf16>
    %c0_9 = arith.constant 0 : index
    %c80 = arith.constant 80 : index
    %24 = vector.load %arg16[%c0_9, %c80] : memref<64x144xbf16, #tpu.memory_space<vmem>>, vector<64x16xbf16>
    tpu.vector_store %arg16[%c0_9, %c80], %23 {strides = array<i32>} : memref<64x144xbf16, #tpu.memory_space<vmem>>, vector<64x16xbf16>,
    %25 = vector.extract_strided_slice %0 {offsets = [0, 1, 0, 0], sizes = [1, 8, 8, 16], strides = [1, 1, 1, 1]} : vector<4x9x9x16xbf16> to vector<1x8x8x16xbf16>
    %26 = vector.shape_cast %25 : vector<1x8x8x16xbf16> to vector<8x8x16xbf16>
    %27 = vector.shape_cast %26 : vector<8x8x16xbf16> to vector<64x16xbf16>
    %c0_10 = arith.constant 0 : index
    %c96 = arith.constant 96 : index
    %28 = vector.load %arg16[%c0_10, %c96] : memref<64x144xbf16, #tpu.memory_space<vmem>>, vector<64x16xbf16>
    tpu.vector_store %arg16[%c0_10, %c96], %27 {strides = array<i32>} : memref<64x144xbf16, #tpu.memory_space<vmem>>, vector<64x16xbf16>,
    %29 = vector.extract_strided_slice %0 {offsets = [1, 1, 0, 0], sizes = [1, 8, 8, 16], strides = [1, 1, 1, 1]} : vector<4x9x9x16xbf16> to vector<1x8x8x16xbf16>
    %30 = vector.shape_cast %29 : vector<1x8x8x16xbf16> to vector<8x8x16xbf16>
    %31 = vector.shape_cast %30 : vector<8x8x16xbf16> to vector<64x16xbf16>
    %c0_11 = arith.constant 0 : index
    %c112 = arith.constant 112 : index
    %32 = vector.load %arg16[%c0_11, %c112] : memref<64x144xbf16, #tpu.memory_space<vmem>>, vector<64x16xbf16>
    tpu.vector_store %arg16[%c0_11, %c112], %31 {strides = array<i32>} : memref<64x144xbf16, #tpu.memory_space<vmem>>, vector<64x16xbf16>,
    %33 = vector.extract_strided_slice %0 {offsets = [0, 1, 1, 0], sizes = [1, 8, 8, 16], strides = [1, 1, 1, 1]} : vector<4x9x9x16xbf16> to vector<1x8x8x16xbf16>
    %34 = vector.shape_cast %33 : vector<1x8x8x16xbf16> to vector<8x8x16xbf16>
    %35 = vector.shape_cast %34 : vector<8x8x16xbf16> to vector<64x16xbf16>
    %c0_12 = arith.constant 0 : index
    %c128 = arith.constant 128 : index
    %36 = vector.load %arg16[%c0_12, %c128] : memref<64x144xbf16, #tpu.memory_space<vmem>>, vector<64x16xbf16>
    tpu.vector_store %arg16[%c0_12, %c128], %35 {strides = array<i32>} : memref<64x144xbf16, #tpu.memory_space<vmem>>, vector<64x16xbf16>,
    %c0_13 = arith.constant 0 : index
    %c0_14 = arith.constant 0 : index
    %37 = vector.load %arg16[%c0_13, %c0_14] : memref<64x144xbf16, #tpu.memory_space<vmem>>, vector<64x144xbf16>
    %c0_15 = arith.constant 0 : index
    %c0_16 = arith.constant 0 : index
    %38 = vector.load %arg2[%c0_15, %c0_16] : memref<144x32xbf16, #tpu.memory_space<vmem>>, vector<144x32xbf16>
    %cst = arith.constant dense<0.000000e+00> : vector<64x32xf32>
    %39 = tpu.matmul %37, %38, %cst {dimension_numbers = #tpu.dot_dimension_numbers<[1], [0], [0], [1], [0, 0, 1, 1], [], []>} : vector<64x144xbf16>, vector<144x32xbf16>, vector<64x32xf32> -> vector<64x32xf32>
    %c0_17 = arith.constant 0 : index
    %c0_18 = arith.constant 0 : index
    %40 = vector.load %arg3[%c0_17, %c0_18] : memref<1x32xf32, #tpu.memory_space<vmem>>, vector<1x32xf32>
    %41 = vector.shape_cast %40 : vector<1x32xf32> to vector<32xf32>
    %42 = vector.shape_cast %41 : vector<32xf32> to vector<1x32xf32>
    %43 = vector.broadcast %42 : vector<1x32xf32> to vector<64x32xf32>
    %44 = arith.mulf %39, %43 : vector<64x32xf32>
    %c0_19 = arith.constant 0 : index
    %c0_20 = arith.constant 0 : index
    %45 = vector.load %arg4[%c0_19, %c0_20] : memref<1x32xf32, #tpu.memory_space<vmem>>, vector<1x32xf32>
    %46 = vector.shape_cast %45 : vector<1x32xf32> to vector<32xf32>
    %47 = vector.shape_cast %46 : vector<32xf32> to vector<1x32xf32>
    %48 = vector.broadcast %47 : vector<1x32xf32> to vector<64x32xf32>
    %49 = arith.addf %44, %48 : vector<64x32xf32>
    %cst_21 = arith.constant 0.000000e+00 : f32
    %50 = vector.broadcast %cst_21 : f32 to vector<64x32xf32>
    %51 = arith.maximumf %49, %50 : vector<64x32xf32>
    %cst_22 = arith.constant 0.000000e+00 : f32
    %52 = vector.broadcast %cst_22 : f32 to vector<10x10x32xf32>
    %c0_23 = arith.constant 0 : index
    %c0_24 = arith.constant 0 : index
    %c0_25 = arith.constant 0 : index
    %53 = vector.load %arg17[%c0_23, %c0_24, %c0_25] : memref<10x10x32xf32, #tpu.memory_space<vmem>>, vector<10x10x32xf32>
    tpu.vector_store %arg17[%c0_23, %c0_24, %c0_25], %52 {strides = array<i32>} : memref<10x10x32xf32, #tpu.memory_space<vmem>>, vector<10x10x32xf32>,
    %54 = vector.shape_cast %51 : vector<64x32xf32> to vector<8x8x32xf32>
    %c1 = arith.constant 1 : index
    %c1_26 = arith.constant 1 : index
    %c0_27 = arith.constant 0 : index
    %55 = vector.load %arg17[%c1, %c1_26, %c0_27] : memref<10x10x32xf32, #tpu.memory_space<vmem>>, vector<8x8x32xf32>
    tpu.vector_store %arg17[%c1, %c1_26, %c0_27], %54 {strides = array<i32>} : memref<10x10x32xf32, #tpu.memory_space<vmem>>, vector<8x8x32xf32>,
    %c0_28 = arith.constant 0 : index
    %c0_29 = arith.constant 0 : index
    %c0_30 = arith.constant 0 : index
    %56 = vector.load %arg17[%c0_28, %c0_29, %c0_30] : memref<10x10x32xf32, #tpu.memory_space<vmem>>, vector<8x8x32xf32>
    %57 = vector.shape_cast %56 : vector<8x8x32xf32> to vector<64x32xf32>
    %c0_31 = arith.constant 0 : index
    %c0_32 = arith.constant 0 : index
    %58 = vector.load %arg18[%c0_31, %c0_32] : memref<64x288xf32, #tpu.memory_space<vmem>>, vector<64x32xf32>
    tpu.vector_store %arg18[%c0_31, %c0_32], %57 {strides = array<i32>} : memref<64x288xf32, #tpu.memory_space<vmem>>, vector<64x32xf32>,
    %c0_33 = arith.constant 0 : index
    %c1_34 = arith.constant 1 : index
    %c0_35 = arith.constant 0 : index
    %59 = vector.load %arg17[%c0_33, %c1_34, %c0_35] : memref<10x10x32xf32, #tpu.memory_space<vmem>>, vector<8x8x32xf32>
    %60 = vector.shape_cast %59 : vector<8x8x32xf32> to vector<64x32xf32>
    %c0_36 = arith.constant 0 : index
    %c32_37 = arith.constant 32 : index
    %61 = vector.load %arg18[%c0_36, %c32_37] : memref<64x288xf32, #tpu.memory_space<vmem>>, vector<64x32xf32>
    tpu.vector_store %arg18[%c0_36, %c32_37], %60 {strides = array<i32>} : memref<64x288xf32, #tpu.memory_space<vmem>>, vector<64x32xf32>,
    %c0_38 = arith.constant 0 : index
    %c2 = arith.constant 2 : index
    %c0_39 = arith.constant 0 : index
    %62 = vector.load %arg17[%c0_38, %c2, %c0_39] : memref<10x10x32xf32, #tpu.memory_space<vmem>>, vector<8x8x32xf32>
    %63 = vector.shape_cast %62 : vector<8x8x32xf32> to vector<64x32xf32>
    %c0_40 = arith.constant 0 : index
    %c64_41 = arith.constant 64 : index
    %64 = vector.load %arg18[%c0_40, %c64_41] : memref<64x288xf32, #tpu.memory_space<vmem>>, vector<64x32xf32>
    tpu.vector_store %arg18[%c0_40, %c64_41], %63 {strides = array<i32>} : memref<64x288xf32, #tpu.memory_space<vmem>>, vector<64x32xf32>,
    %c1_42 = arith.constant 1 : index
    %c0_43 = arith.constant 0 : index
    %c0_44 = arith.constant 0 : index
    %65 = vector.load %arg17[%c1_42, %c0_43, %c0_44] : memref<10x10x32xf32, #tpu.memory_space<vmem>>, vector<8x8x32xf32>
    %66 = vector.shape_cast %65 : vector<8x8x32xf32> to vector<64x32xf32>
    %c0_45 = arith.constant 0 : index
    %c96_46 = arith.constant 96 : index
    %67 = vector.load %arg18[%c0_45, %c96_46] : memref<64x288xf32, #tpu.memory_space<vmem>>, vector<64x32xf32>
    tpu.vector_store %arg18[%c0_45, %c96_46], %66 {strides = array<i32>} : memref<64x288xf32, #tpu.memory_space<vmem>>, vector<64x32xf32>,
    %c1_47 = arith.constant 1 : index
    %c1_48 = arith.constant 1 : index
    %c0_49 = arith.constant 0 : index
    %68 = vector.load %arg17[%c1_47, %c1_48, %c0_49] : memref<10x10x32xf32, #tpu.memory_space<vmem>>, vector<8x8x32xf32>
    %69 = vector.shape_cast %68 : vector<8x8x32xf32> to vector<64x32xf32>
    %c0_50 = arith.constant 0 : index
    %c128_51 = arith.constant 128 : index
    %70 = vector.load %arg18[%c0_50, %c128_51] : memref<64x288xf32, #tpu.memory_space<vmem>>, vector<64x32xf32>
    tpu.vector_store %arg18[%c0_50, %c128_51], %69 {strides = array<i32>} : memref<64x288xf32, #tpu.memory_space<vmem>>, vector<64x32xf32>,
    %c1_52 = arith.constant 1 : index
    %c2_53 = arith.constant 2 : index
    %c0_54 = arith.constant 0 : index
    %71 = vector.load %arg17[%c1_52, %c2_53, %c0_54] : memref<10x10x32xf32, #tpu.memory_space<vmem>>, vector<8x8x32xf32>
    %72 = vector.shape_cast %71 : vector<8x8x32xf32> to vector<64x32xf32>
    %c0_55 = arith.constant 0 : index
    %c160 = arith.constant 160 : index
    %73 = vector.load %arg18[%c0_55, %c160] : memref<64x288xf32, #tpu.memory_space<vmem>>, vector<64x32xf32>
    tpu.vector_store %arg18[%c0_55, %c160], %72 {strides = array<i32>} : memref<64x288xf32, #tpu.memory_space<vmem>>, vector<64x32xf32>,
    %c2_56 = arith.constant 2 : index
    %c0_57 = arith.constant 0 : index
    %c0_58 = arith.constant 0 : index
    %74 = vector.load %arg17[%c2_56, %c0_57, %c0_58] : memref<10x10x32xf32, #tpu.memory_space<vmem>>, vector<8x8x32xf32>
    %75 = vector.shape_cast %74 : vector<8x8x32xf32> to vector<64x32xf32>
    %c0_59 = arith.constant 0 : index
    %c192 = arith.constant 192 : index
    %76 = vector.load %arg18[%c0_59, %c192] : memref<64x288xf32, #tpu.memory_space<vmem>>, vector<64x32xf32>
    tpu.vector_store %arg18[%c0_59, %c192], %75 {strides = array<i32>} : memref<64x288xf32, #tpu.memory_space<vmem>>, vector<64x32xf32>,
    %c2_60 = arith.constant 2 : index
    %c1_61 = arith.constant 1 : index
    %c0_62 = arith.constant 0 : index
    %77 = vector.load %arg17[%c2_60, %c1_61, %c0_62] : memref<10x10x32xf32, #tpu.memory_space<vmem>>, vector<8x8x32xf32>
    %78 = vector.shape_cast %77 : vector<8x8x32xf32> to vector<64x32xf32>
    %c0_63 = arith.constant 0 : index
    %c224 = arith.constant 224 : index
    %79 = vector.load %arg18[%c0_63, %c224] : memref<64x288xf32, #tpu.memory_space<vmem>>, vector<64x32xf32>
    tpu.vector_store %arg18[%c0_63, %c224], %78 {strides = array<i32>} : memref<64x288xf32, #tpu.memory_space<vmem>>, vector<64x32xf32>,
    %c2_64 = arith.constant 2 : index
    %c2_65 = arith.constant 2 : index
    %c0_66 = arith.constant 0 : index
    %80 = vector.load %arg17[%c2_64, %c2_65, %c0_66] : memref<10x10x32xf32, #tpu.memory_space<vmem>>, vector<8x8x32xf32>
    %81 = vector.shape_cast %80 : vector<8x8x32xf32> to vector<64x32xf32>
    %c0_67 = arith.constant 0 : index
    %c256 = arith.constant 256 : index
    %82 = vector.load %arg18[%c0_67, %c256] : memref<64x288xf32, #tpu.memory_space<vmem>>, vector<64x32xf32>
    tpu.vector_store %arg18[%c0_67, %c256], %81 {strides = array<i32>} : memref<64x288xf32, #tpu.memory_space<vmem>>, vector<64x32xf32>,
    %c0_68 = arith.constant 0 : index
    %c0_69 = arith.constant 0 : index
    %83 = vector.load %arg18[%c0_68, %c0_69] : memref<64x288xf32, #tpu.memory_space<vmem>>, vector<64x288xf32>
    %84 = arith.truncf %83 : vector<64x288xf32> to vector<64x288xbf16>
    %c0_70 = arith.constant 0 : index
    %c0_71 = arith.constant 0 : index
    %85 = vector.load %arg5[%c0_70, %c0_71] : memref<288x32xbf16, #tpu.memory_space<vmem>>, vector<288x32xbf16>
    %cst_72 = arith.constant dense<0.000000e+00> : vector<64x32xf32>
    %86 = tpu.matmul %84, %85, %cst_72 {dimension_numbers = #tpu.dot_dimension_numbers<[1], [0], [0], [1], [0, 0, 1, 1], [], []>} : vector<64x288xbf16>, vector<288x32xbf16>, vector<64x32xf32> -> vector<64x32xf32>
    %c0_73 = arith.constant 0 : index
    %c0_74 = arith.constant 0 : index
    %87 = vector.load %arg6[%c0_73, %c0_74] : memref<1x32xf32, #tpu.memory_space<vmem>>, vector<1x32xf32>
    %88 = vector.shape_cast %87 : vector<1x32xf32> to vector<32xf32>
    %89 = vector.shape_cast %88 : vector<32xf32> to vector<1x32xf32>
    %90 = vector.broadcast %89 : vector<1x32xf32> to vector<64x32xf32>
    %91 = arith.mulf %86, %90 : vector<64x32xf32>
    %c0_75 = arith.constant 0 : index
    %c0_76 = arith.constant 0 : index
    %92 = vector.load %arg7[%c0_75, %c0_76] : memref<1x32xf32, #tpu.memory_space<vmem>>, vector<1x32xf32>
    %93 = vector.shape_cast %92 : vector<1x32xf32> to vector<32xf32>
    %94 = vector.shape_cast %93 : vector<32xf32> to vector<1x32xf32>
    %95 = vector.broadcast %94 : vector<1x32xf32> to vector<64x32xf32>
    %96 = arith.addf %91, %95 : vector<64x32xf32>
    %97 = vector.extract_strided_slice %0 {offsets = [3, 0, 0, 0], sizes = [1, 8, 8, 16], strides = [1, 1, 1, 1]} : vector<4x9x9x16xbf16> to vector<1x8x8x16xbf16>
    %98 = vector.shape_cast %97 : vector<1x8x8x16xbf16> to vector<8x8x16xbf16>
    %99 = vector.shape_cast %98 : vector<8x8x16xbf16> to vector<64x16xbf16>
    %c0_77 = arith.constant 0 : index
    %c0_78 = arith.constant 0 : index
    %100 = vector.load %arg8[%c0_77, %c0_78] : memref<16x32xbf16, #tpu.memory_space<vmem>>, vector<16x32xbf16>
    %cst_79 = arith.constant dense<0.000000e+00> : vector<64x32xf32>
    %101 = tpu.matmul %99, %100, %cst_79 {dimension_numbers = #tpu.dot_dimension_numbers<[1], [0], [0], [1], [0, 0, 1, 1], [], []>} : vector<64x16xbf16>, vector<16x32xbf16>, vector<64x32xf32> -> vector<64x32xf32>
    %c0_80 = arith.constant 0 : index
    %c0_81 = arith.constant 0 : index
    %102 = vector.load %arg9[%c0_80, %c0_81] : memref<1x32xf32, #tpu.memory_space<vmem>>, vector<1x32xf32>
    %103 = vector.shape_cast %102 : vector<1x32xf32> to vector<32xf32>
    %104 = vector.shape_cast %103 : vector<32xf32> to vector<1x32xf32>
    %105 = vector.broadcast %104 : vector<1x32xf32> to vector<64x32xf32>
    %106 = arith.mulf %101, %105 : vector<64x32xf32>
    %c0_82 = arith.constant 0 : index
    %c0_83 = arith.constant 0 : index
    %107 = vector.load %arg10[%c0_82, %c0_83] : memref<1x32xf32, #tpu.memory_space<vmem>>, vector<1x32xf32>
    %108 = vector.shape_cast %107 : vector<1x32xf32> to vector<32xf32>
    %109 = vector.shape_cast %108 : vector<32xf32> to vector<1x32xf32>
    %110 = vector.broadcast %109 : vector<1x32xf32> to vector<64x32xf32>
    %111 = arith.addf %106, %110 : vector<64x32xf32>
    %cst_84 = arith.constant dense<0.000000e+00> : vector<32xf32>
    %112 = vector.multi_reduction <add>, %96, %cst_84 [0] : vector<64x32xf32> to vector<32xf32>
    %113 = vector.shape_cast %112 : vector<32xf32> to vector<1x32xf32>
    %cst_85 = arith.constant 6.400000e+01 : f32
    %114 = vector.broadcast %cst_85 : f32 to vector<1x32xf32>
    %115 = arith.divf %113, %114 : vector<1x32xf32>
    %c0_86 = arith.constant 0 : index
    %c0_87 = arith.constant 0 : index
    %116 = vector.load %arg11[%c0_86, %c0_87] : memref<32x2xf32, #tpu.memory_space<vmem>>, vector<32x2xf32>
    %cst_88 = arith.constant dense<0.000000e+00> : vector<1x2xf32>
    %117 = tpu.matmul %115, %116, %cst_88 {dimension_numbers = #tpu.dot_dimension_numbers<[1], [0], [0], [1], [0, 0, 1, 1], [], []>} : vector<1x32xf32>, vector<32x2xf32>, vector<1x2xf32> -> vector<1x2xf32>
    %c0_89 = arith.constant 0 : index
    %c0_90 = arith.constant 0 : index
    %118 = vector.load %arg12[%c0_89, %c0_90] : memref<1x2xf32, #tpu.memory_space<vmem>>, vector<1x2xf32>
    %119 = arith.addf %117, %118 : vector<1x2xf32>
    %cst_91 = arith.constant 0.000000e+00 : f32
    %120 = vector.broadcast %cst_91 : f32 to vector<1x2xf32>
    %121 = arith.maximumf %119, %120 : vector<1x2xf32>
    %c0_92 = arith.constant 0 : index
    %c0_93 = arith.constant 0 : index
    %122 = vector.load %arg13[%c0_92, %c0_93] : memref<2x32xf32, #tpu.memory_space<vmem>>, vector<2x32xf32>
    %cst_94 = arith.constant dense<0.000000e+00> : vector<1x32xf32>
    %123 = tpu.matmul %121, %122, %cst_94 {dimension_numbers = #tpu.dot_dimension_numbers<[1], [0], [0], [1], [0, 0, 1, 1], [], []>} : vector<1x2xf32>, vector<2x32xf32>, vector<1x32xf32> -> vector<1x32xf32>
    %c0_95 = arith.constant 0 : index
    %c0_96 = arith.constant 0 : index
    %124 = vector.load %arg14[%c0_95, %c0_96] : memref<1x32xf32, #tpu.memory_space<vmem>>, vector<1x32xf32>
    %125 = arith.addf %123, %124 : vector<1x32xf32>
    %126 = arith.negf %125 : vector<1x32xf32>
    %127 = math.exp %126 : vector<1x32xf32>
    %cst_97 = arith.constant 1.000000e+00 : f32
    %128 = vector.broadcast %cst_97 : f32 to vector<1x32xf32>
    %129 = arith.addf %128, %127 : vector<1x32xf32>
    %130 = arith.divf %128, %129 : vector<1x32xf32>
    %131 = vector.broadcast %130 : vector<1x32xf32> to vector<64x32xf32>
    %132 = arith.mulf %96, %131 : vector<64x32xf32>
    %133 = arith.addf %132, %111 : vector<64x32xf32>
    %cst_98 = arith.constant 0.000000e+00 : f32
    %134 = vector.broadcast %cst_98 : f32 to vector<64x32xf32>
    %135 = arith.maximumf %133, %134 : vector<64x32xf32>
    %136 = vector.shape_cast %135 : vector<64x32xf32> to vector<1x8x8x32xf32>
    %c0_99 = arith.constant 0 : index
    %c0_100 = arith.constant 0 : index
    %c0_101 = arith.constant 0 : index
    %c0_102 = arith.constant 0 : index
    %137 = vector.load %arg15[%c0_99, %c0_100, %c0_101, %c0_102] : memref<1x8x8x32xf32, #tpu.memory_space<vmem>>, vector<1x8x8x32xf32>
    tpu.vector_store %arg15[%c0_99, %c0_100, %c0_101, %c0_102], %136 {strides = array<i32>} : memref<1x8x8x32xf32, #tpu.memory_space<vmem>>, vector<1x8x8x32xf32>,
    return
  }
  func.func @transform_0(%arg0: i32) -> (i32, i32, i32, i32) {
    %c0_i32 = arith.constant 0 : i32
    %c0_i32_0 = arith.constant 0 : i32
    %c0_i32_1 = arith.constant 0 : i32
    %c0_i32_2 = arith.constant 0 : i32
    return %arg0, %c0_i32, %c0_i32_0, %c0_i32_1 : i32, i32, i32, i32
  }
  func.func @transform_1(%arg0: i32) -> (i32, i32) {
    %c0_i32 = arith.constant 0 : i32
    %c0_i32_0 = arith.constant 0 : i32
    %c0_i32_1 = arith.constant 0 : i32
    return %c0_i32, %c0_i32_0 : i32, i32
  }
  func.func @transform_2(%arg0: i32) -> (i32, i32) {
    %c0_i32 = arith.constant 0 : i32
    %c0_i32_0 = arith.constant 0 : i32
    %c0_i32_1 = arith.constant 0 : i32
    return %c0_i32, %c0_i32_0 : i32, i32
  }
  func.func @transform_3(%arg0: i32) -> (i32, i32) {
    %c0_i32 = arith.constant 0 : i32
    %c0_i32_0 = arith.constant 0 : i32
    %c0_i32_1 = arith.constant 0 : i32
    return %c0_i32, %c0_i32_0 : i32, i32
  }
  func.func @transform_4(%arg0: i32) -> (i32, i32) {
    %c0_i32 = arith.constant 0 : i32
    %c0_i32_0 = arith.constant 0 : i32
    %c0_i32_1 = arith.constant 0 : i32
    return %c0_i32, %c0_i32_0 : i32, i32
  }
  func.func @transform_5(%arg0: i32) -> (i32, i32) {
    %c0_i32 = arith.constant 0 : i32
    %c0_i32_0 = arith.constant 0 : i32
    %c0_i32_1 = arith.constant 0 : i32
    return %c0_i32, %c0_i32_0 : i32, i32
  }
  func.func @transform_6(%arg0: i32) -> (i32, i32) {
    %c0_i32 = arith.constant 0 : i32
    %c0_i32_0 = arith.constant 0 : i32
    %c0_i32_1 = arith.constant 0 : i32
    return %c0_i32, %c0_i32_0 : i32, i32
  }
  func.func @transform_7(%arg0: i32) -> (i32, i32) {
    %c0_i32 = arith.constant 0 : i32
    %c0_i32_0 = arith.constant 0 : i32
    %c0_i32_1 = arith.constant 0 : i32
    return %c0_i32, %c0_i32_0 : i32, i32
  }
  func.func @transform_8(%arg0: i32) -> (i32, i32) {
    %c0_i32 = arith.constant 0 : i32
    %c0_i32_0 = arith.constant 0 : i32
    %c0_i32_1 = arith.constant 0 : i32
    return %c0_i32, %c0_i32_0 : i32, i32
  }
  func.func @transform_9(%arg0: i32) -> (i32, i32) {
    %c0_i32 = arith.constant 0 : i32
    %c0_i32_0 = arith.constant 0 : i32
    %c0_i32_1 = arith.constant 0 : i32
    return %c0_i32, %c0_i32_0 : i32, i32
  }
  func.func @transform_10(%arg0: i32) -> (i32, i32) {
    %c0_i32 = arith.constant 0 : i32
    %c0_i32_0 = arith.constant 0 : i32
    %c0_i32_1 = arith.constant 0 : i32
    return %c0_i32, %c0_i32_0 : i32, i32
  }
  func.func @transform_11(%arg0: i32) -> (i32, i32) {
    %c0_i32 = arith.constant 0 : i32
    %c0_i32_0 = arith.constant 0 : i32
    %c0_i32_1 = arith.constant 0 : i32
    return %c0_i32, %c0_i32_0 : i32, i32
  }
  func.func @transform_12(%arg0: i32) -> (i32, i32) {
    %c0_i32 = arith.constant 0 : i32
    %c0_i32_0 = arith.constant 0 : i32
    %c0_i32_1 = arith.constant 0 : i32
    return %c0_i32, %c0_i32_0 : i32, i32
  }
  func.func @transform_13(%arg0: i32) -> (i32, i32) {
    %c0_i32 = arith.constant 0 : i32
    %c0_i32_0 = arith.constant 0 : i32
    %c0_i32_1 = arith.constant 0 : i32
    return %c0_i32, %c0_i32_0 : i32, i32
  }
  func.func @transform_14(%arg0: i32) -> (i32, i32, i32, i32) {
    %c0_i32 = arith.constant 0 : i32
    %c0_i32_0 = arith.constant 0 : i32
    %c0_i32_1 = arith.constant 0 : i32
    %c0_i32_2 = arith.constant 0 : i32
    return %arg0, %c0_i32, %c0_i32_0, %c0_i32_1 : i32, i32, i32, i32
  }
}

</mosaic_0001>

<bundles_post_ra>
// kernel: tpu_custom_call.1
= control target key start
LH: loop header
LB: loop body
LE: loop exit
PB: predicated region body
PF: predicated region fallthrough
CT: control target
= control target key end

     0   :  { %19 = vsyncpa [#allocation6], 0  ;;  %s3569_s0 = inlined_call_operand.vmem [shape: bf16[8,9,9,16], index: 0, kind: input, shape index: {}]   ;;  %s3570_s1 = inlined_call_operand.vmem [shape: bf16[144,32], index: 1, kind: input, shape index: {}]   ;;  %s3571_s2 = inlined_call_operand.vmem [shape: f32[1,32], index: 2, kind: input, shape index: {}]   ;;  %s3572_s3 = inlined_call_operand.vmem [shape: f32[1,32], index: 3, kind: input, shape index: {}]   ;;  %s3573_s4 = inlined_call_operand.vmem [shape: bf16[288,32], index: 4, kind: input, shape index: {}]   ;;  %s3574_s5 = inlined_call_operand.vmem [shape: f32[1,32], index: 5, kind: input, shape index: {}]   ;;  %s3575_s6 = inlined_call_operand.vmem [shape: f32[1,32], index: 6, kind: input, shape index: {}]   ;;  %s3576_s7 = inlined_call_operand.vmem [shape: bf16[16,32], index: 7, kind: input, shape index: {}]   ;;  %s3577_s8 = inlined_call_operand.vmem [shape: f32[1,32], index: 8, kind: input, shape index: {}]   ;;  %s3578_s9 = inlined_call_operand.vmem [shape: f32[1,32], index: 9, kind: input, shape index: {}]   ;;  %s3579_s10 = inlined_call_operand.vmem [shape: f32[32,2], index: 10, kind: input, shape index: {}]   ;;  %s3580_s11 = inlined_call_operand.vmem [shape: f32[1,2], index: 11, kind: input, shape index: {}]   ;;  %s3581_s12 = inlined_call_operand.vmem [shape: f32[2,32], index: 12, kind: input, shape index: {}]   ;;  %s3582_s13 = inlined_call_operand.vmem [shape: f32[1,32], index: 13, kind: input, shape index: {}]   ;;  %s3583_s14 = inlined_call_operand.hbm [shape: f32[2,8,8,32], index: 14, kind: output, shape index: {}]  }
   0x1   :  { %21 = vsyncpa [#allocation6 + $0x1], 0  ;;  %s2809_s29 = smov 0   ;;  %s2811_s30 = smov 0  }
   0x2   :  { %s2813_s15 = smov 0   ;;  %s2815_s16 = smov 0  }
   0x3 LB: > { %3590 = sst [smem:[#allocation8_spill]] %s2714_s15  ;;  %s2830_s17 = sadd.s32 4294967295, %s2718_s16   ;;  %s2718_s16 = sphi %s2815_s16, %s3600_s16   ;;  %s2714_s15 = sphi %s2813_s15, %s3602_s15   ;;  %s2710_s30 = sphi %s2811_s30, %s3604_s30   ;;  %s2706_s29 = sphi %s2809_s29, %s3603_s29  }
   0x4   : > { %s2354_s18 = sadd.s32 4294967294, %s2718_s16   ;;  %s2834_s19 = sadd.s32 1, %s2718_s16  }
   0x5   : > { %3591 = sst [smem:[#allocation9_spill]] %s2834_s19  ;;  %s333_s20 = sadd.s32 1, %s2714_s15 }
   0x6   : > { %s330_s21 = ssub.s32 %s2718_s16, %s2834_s19  ;;  %p343_p0 = scmp.ne.s32.totalorder %s2714_s15, %s2710_s30 }
   0x7   : > { %p331_p1 = scmp.eq.s32.totalorder %s330_s21, 0  ;;  %p344_p2 = scmp.eq.s32.totalorder %s2830_s17, 1 }
   0x8   : > { %p349_p3 = scmp.ne.s32.totalorder %s2710_s30, %s2706_s29  ;;  %p350_p4 = scmp.eq.s32.totalorder %s2354_s18, 1 }
   0x9   : > { %s2845_s22 = scalar_select %p331_p1, %s2714_s15, %s333_s20  }
   0xa   : > { %p2847_p5 = por %p344_p2, %p343_p0  ;;  %p2851_p6 = por %p350_p4, %p349_p3 }
   0xb   : > { %3592 = sst [smem:[#allocation10_spill]] %s2845_s22  ;;  %p2357_p7 = scmp.ge.s32.totalorder %s2718_s16, 1 }
   0xc   : > { %s3594_s24 = scalar_select %p2851_p6, 1, 0 }
   0xd   : > { %p417_p8 = scmp.lt.s32.totalorder %s2718_s16, 3 }
   0xe   : > { %3595 = sst [smem:[#allocation11_spill]] %s3594_s24 }
   0xf   : > { %p418_p9 = pnand %p2357_p7, %p417_p8 }
  0x10   : > { %s2359_s25 = sshll.u32 (!%p418_p9), %s2830_s17, 2  ;;  %v2720_v0 = vmov (!%p418_p9), 0   ;;  %v2622_v1 = vld [vmem:[%s3570_s1] sm:$0xff] (!%p418_p9)   ;;  %v2623_v2 = vld [vmem:[%s3570_s1 + $0x8] sm:$0xff] (!%p418_p9)   ;;  %v2624_v3 = vld [vmem:[%s3570_s1 + $0x10] sm:$0xff] (!%p418_p9)   ;;  %s2721_s19 = smov (!%p418_p9), 16  }
  0x11   : > { %421 = sbr.rel (%p418_p9) target bundleno = 1350 (0x546), region = 76  ;;  %p465_p10 = scmp.lt.s32.totalorder (!%p418_p9), %s2359_s25, 7  ;;  %1113 = vmatprep.subr.bf16.mxu0 (!%p418_p9), %v2720_v0  ;;  %vm589_vm0 = vsmask.f32 (!%p418_p9), 3328  ;;  %vm590_vm1 = vsmask.f32 (!%p418_p9), 7440 }
  0x12   : > { %1114 = vmatpush1.bf16.msra.mxu0 (!%p418_p9), %v2622_v1  ;;  %vm547_vm2 = vcmask (!%p418_p9), 130048   ;;  %s2722_s22 = smov (!%p418_p9), 48   ;;  %v2625_v20 = vld [vmem:[%s3570_s1 + $0x18] sm:$0xff] (!%p418_p9)   ;;  %v2626_v29 = vld [vmem:[%s3570_s1 + $0x20] sm:$0xff] (!%p418_p9)   ;;  %s2723_s28 = smov (!%p418_p9), 112   ;;  %vm2922_vm3 = vmor (!%p418_p9), %vm589_vm0, %vm590_vm1  ;;  %vm584_vm4 = vcmask (!%p418_p9), 261248  }
  0x13   : > { %1115 = vmatprep.subr.bf16.mxu0 (!%p418_p9), %v2720_v0  ;;  %s2724_s18 = smov (!%p418_p9), 64   ;;  %v2627_v62 = vld [vmem:[%s3570_s1 + $0x28] sm:$0xff] (!%p418_p9)   ;;  %s3588_s24 = smov (!%p418_p9), 32   ;;  %vm728_vm5 = vcmask (!%p418_p9), 392448   ;;  %vm765_vm6 = vcmask (!%p418_p9), 523648   ;;  %vm802_vm7 = vcmask (!%p418_p9), 654848  }
  0x14   : > { %vm943_vm8 = vcmask (!%p418_p9), 786048   ;;  %vm966_vm9 = vcmask (!%p418_p9), 917248   ;;  %vm989_vm10 = vcmask (!%p418_p9), 1048448   ;;  %vm1216_vm11 = vcmask (!%p418_p9), 261120   ;;  %s2452_s26 = sshll.u32 (!%p418_p9), %s2830_s17, 10 }
  0x15   : > { %vm1218_vm12 = vcmask (!%p418_p9), 254976   ;;  %vm1303_vm13 = vcmask (!%p418_p9), 523520   ;;  %vm1352_vm14 = vcmask (!%p418_p9), 785920   ;;  %vm1401_vm15 = vcmask (!%p418_p9), 1048320  }
  0x16   : > { %1116 = vmatpush1.bf16.msra.mxu0 (!%p418_p9), %v2623_v2  ;;  %vm2730_vm0 = vmmov (!%p418_p9), 0   ;;  %vm2162_vm1 = vcmask (!%p418_p9), 1041408  }
  0x17   : > { %1117 = vmatprep.subr.bf16.mxu0 (!%p418_p9), %v2720_v0 }
  0x18   : > { %s3606_s25 = smov (!%p465_p10, %s2359_s25), 7 }
  0x19   : > { %s2555_s20 = smul.u32 72, %s3606_s25  ;;  %s2727_s25 = smov 80  }
  0x1a   : > { %1118 = vmatpush1.bf16.msra.mxu0 %v2624_v3 }
  0x1b   : > { %s2869_s15 = scalar_lea.vmem %s3569_s0, %s2555_s20  ;;  %1119 = vmatprep.subr.bf16.mxu0 %v2720_v0  ;;  %s2725_s20 = smov 96  }
  0x1c   : > { %v490_v4 = vld [vmem:[%s2869_s15 + $0x48] sm:$0xf]  ;;  %v491_v5 = vld [vmem:[%s2869_s15 + $0x50] sm:$0xf]  ;;  %v2877_v6 = vld [vmem:[%s2869_s15 + $0x58] sm:$0xf] }
  0x1d   : > { %v2365_v7 = vcombine.low %v490_v4, %v491_v5  ;;  %v499_v8 = vld [vmem:[%s2869_s15 + $0x90] sm:$0xf]  ;;  %v501_v9 = vld [vmem:[%s2869_s15 + $0x98] sm:$0xf]  ;;  %v2389_v14 = vcombine.low %v491_v5, %v2877_v6  ;;  %v474_v23 = vld [vmem:[%s2869_s15 + $0x8] sm:$0xf] }
  0x1e   : > { %v2373_v10 = vcombine.low %v499_v8, %v501_v9  ;;  %v808_v11 = vshrl.u32 %v499_v8, 16  ;;  %v811_v12 = vshll.u32 %v499_v8, 16  ;;  %v822_v13 = vshrl.u32 %v501_v9, 16  ;;  %v2885_v16 = vld [vmem:[%s2869_s15 + $0xd8] ss:$8 sps:$4 sm:$0xff]   ;;  %1120 = vmatpush1.bf16.msra.mxu0 %v2625_v20 }
  0x1f   : > { %572 = vrot.lane.b32.xlu0 %v2365_v7, %s2721_s19  ;;  %v825_v15 = vshll.u32 %v501_v9, 16  ;;  %v2612_v22 = vld [vmem:[%s2869_s15 + $0xe8] ss:$8 sps:$4 sm:$0xff]   ;;  %v607_v26 = vshrl.u32 %v474_v23, 16  ;;  %v610_v27 = vshll.u32 %v474_v23, 16  ;;  %1121 = vmatprep.subr.bf16.mxu0 %v2720_v0 }
  0x20   : > { %v810_v17 = vrot.slane %v808_v11, 4  ;;  %v813_v18 = vrot.slane %v811_v12, 5  ;;  %v824_v19 = vrot.slane %v822_v13, 4  ;;  %753 = vrot.lane.b32.xlu1 %v2373_v10, %s2722_s22  ;;  %v2895_v25 = vld [vmem:[%s2869_s15 + $0x10] sm:$0xf] }
  0x21   : > { %v827_v21 = vrot.slane %v825_v15, 5  ;;  %v472_v28 = vld [vmem:[%s2869_s15] sm:$0xf]  ;;  %v621_v31 = vshrl.u32 %v2895_v25, 16  ;;  %v624_v32 = vshll.u32 %v2895_v25, 16  ;;  %v2385_v33 = vcombine.low %v474_v23, %v2895_v25 }
  0x22   : > { %v814_v24 = vor.u32 %v813_v18, %v810_v17  ;;  %v473_v34 = vld [vmem:[%s2869_s15 + $0x4] sm:$0x1]  ;;  %v475_v35 = vld [vmem:[%s2869_s15 + $0xc] sm:$0x1]  ;;  %v593_v37 = vshrl.u32 %v472_v28, 16  ;;  %v596_v38 = vshll.u32 %v472_v28, 16  ;;  %v2361_v61 = vcombine.low %v472_v28, %v474_v23  ;;  %1122 = vmatpush1.bf16.msra.mxu0 %v2626_v29 }
  0x23   : > { %v828_v30 = vor.u32 %v827_v21, %v824_v19  ;;  %977 = vrot.lane.b32.xlu0 %v2389_v14, %s2723_s28  ;;  %v602_v39 = vshll.u32 %v473_v34, 16  ;;  %v2910_v40 = vld [vmem:[%s2869_s15 + $0x60] sm:$0xf]  ;;  %v609_v42 = vrot.slane %v607_v26, 4  ;;  %v612_v43 = vrot.slane %v610_v27, 5  ;;  %1123 = vmatprep.subr.bf16.mxu0 %v2720_v0  ;;  %v2628_v21 = vld [vmem:[%s3570_s1 + $0x30] sm:$0xff]  }
  0x24   : > { %v815_v36 = vrot.slane %v814_v24, 4  ;;  %790 = vrot.lane.b32.xlu1 %v2885_v16, %s2724_s18  ;;  %v616_v44 = vshll.u32 %v475_v35, 16  ;;  %v500_v45 = vld [vmem:[%s2869_s15 + $0x94] sm:$0x1]  ;;  %v595_v46 = vrot.slane %v593_v37, 4  ;;  %v598_v47 = vrot.slane %v596_v38, 5 }
  0x25   : > { %v829_v41 = vrot.slane %v828_v30, 4  ;;  %v604_v48 = vrot.slane %v602_v39, 5  ;;  %v2366_v49 = vcombine.low %v2877_v6, %v2910_v40  ;;  %v502_v50 = vld [vmem:[%s2869_s15 + $0x9c] sm:$0x1]  ;;  %v613_v51 = vor.u32 %v612_v43, %v609_v42  ;;  %v503_v55 = vld [vmem:[%s2869_s15 + $0xa0] sm:$0xf] }
  0x26   : > { %v618_v52 = vrot.slane %v616_v44, 5  ;;  %v817_v53 = vshll.u32 %v500_v45, 16  ;;  %v831_v54 = vshll.u32 %v502_v50, 16  ;;  %v599_v57 = vor.u32 %v598_v47, %v595_v46  ;;  %v505_v58 = vld [vmem:[%s2869_s15 + $0xa8] sm:$0xf]  ;;  %548 = vst.msk [vmem:[#allocation2] sm:$0xff] %vm547_vm2, %v2361_v61  ;;  %1124 = vmatpush1.bf16.msra.mxu0 %v2627_v62 }
  0x27   : > { %792 = vrot.lane.b32.xlu0 %v2612_v22, %s2724_s18  ;;  %v836_v59 = vshrl.u32 %v503_v55, 16  ;;  %v839_v60 = vshll.u32 %v503_v55, 16  ;;  %v614_v63 = vrot.slane %v613_v51, 4  ;;  %v2374_v3 = vcombine.low %v503_v55, %v505_v58  ;;  %v477_v8 = vld [vmem:[%s2869_s15 + $0x14] sm:$0x1]  ;;  %1125 = vmatprep.subr.bf16.mxu0 %v2720_v0 }
  0x28   : > { %954 = vrot.lane.b32.xlu1 %v2385_v33, %s2725_s20  ;;  %v819_v1 = vrot.slane %v817_v53, 5  ;;  %v833_v2 = vrot.slane %v831_v54, 5  ;;  %v600_v4 = vrot.slane %v599_v57, 4  ;;  %v850_v7 = vshrl.u32 %v505_v58, 16  ;;  %v2942_v13 = vld [vmem:[%s2869_s15 + $0x18] sm:$0xf] }
  0x29   : > { %v838_v5 = vrot.slane %v836_v59, 4  ;;  %v841_v6 = vrot.slane %v839_v60, 5  ;;  %v2935_v9 = vsel %vm2922_vm3, %v614_v63, %v618_v52  ;;  %v853_v12 = vshll.u32 %v505_v58, 16  ;;  %v479_v14 = vld [vmem:[%s2869_s15 + $0x1c] sm:$0x1] }
  0x2a   : > { %v820_v10 = vsel %vm2922_vm3, %v815_v36, %v819_v1  ;;  %v834_v11 = vsel %vm2922_vm3, %v829_v41, %v833_v2  ;;  %v605_v15 = vsel %vm2922_vm3, %v600_v4, %v604_v48  ;;  %v852_v18 = vrot.slane %v850_v7, 4  ;;  %v504_v20 = vld [vmem:[%s2869_s15 + $0xa4] sm:$0x1]  ;;  %v506_v30 = vld [vmem:[%s2869_s15 + $0xac] sm:$0x1]  ;;  %v2629_v33 = vld [vmem:[%s3570_s1 + $0x38] sm:$0xff]   ;;  %1126 = vmatpush1.bf16.msra.mxu0 %v2628_v21 }
  0x2b   : > { %v2381_v17 = vcombine.low %v820_v10, %v834_v11  ;;  %v623_v19 = vrot.slane %v621_v31, 4  ;;  %v2369_v22 = vcombine.low %v605_v15, %v2935_v9  ;;  %v855_v23 = vrot.slane %v853_v12, 5  ;;  %v2964_v37 = vld [vmem:[%s2869_s15 + $0x20] sm:$0xf]  ;;  %v2967_v38 = vld [vmem:[%s2869_s15 + $0x68] sm:$0xf]  ;;  %1127 = vmatprep.subr.bf16.mxu0 %v2720_v0 }
  0x2c   : > { %574 = vrot.lane.b32.xlu1 %v2366_v49, %s2721_s19  ;;  %v626_v24 = vrot.slane %v624_v32, 5  ;;  %v630_v26 = vshll.u32 %v477_v8, 16  ;;  %v635_v27 = vshrl.u32 %v2942_v13, 16  ;;  %v638_v28 = vshll.u32 %v2942_v13, 16  ;;  %v481_v44 = vld [vmem:[%s2869_s15 + $0x24] sm:$0x1] }
  0x2d   : > { %v644_v29 = vshll.u32 %v479_v14, 16  ;;  %v842_v31 = vor.u32 %v841_v6, %v838_v5  ;;  %716 = vrot.lane.b32.xlu0 %v2369_v22, %s3588_s24  ;;  %v845_v35 = vshll.u32 %v504_v20, 16  ;;  %v856_v36 = vor.u32 %v855_v23, %v852_v18  ;;  %v2972_v49 = vld [vmem:[%s2869_s15 + $0x28] sm:$0xf]  ;;  %v483_v58 = vld [vmem:[%s2869_s15 + $0x2c] sm:$0x1] }
  0x2e   : > { %v627_v32 = vor.u32 %v626_v24, %v623_v19  ;;  %v632_v34 = vrot.slane %v630_v26, 5  ;;  %v637_v39 = vrot.slane %v635_v27, 4  ;;  %v640_v41 = vrot.slane %v638_v28, 5  ;;  %v2989_v62 = vld [vmem:[%s2869_s15 + $0x70] sm:$0xf]  ;;  %1128 = vmatpush1.bf16.msra.mxu0 %v2629_v33  ;;  %v2630_v1 = vld [vmem:[%s3570_s1 + $0x40] sm:$0xff]  }
  0x2f   : > { %v646_v42 = vrot.slane %v644_v29, 5  ;;  %v843_v43 = vrot.slane %v842_v31, 4  ;;  %v847_v46 = vrot.slane %v845_v35, 5  ;;  %v857_v47 = vrot.slane %v856_v36, 4  ;;  %v2998_v6 = vld [vmem:[%s2869_s15 + $0xb0] sm:$0xf]  ;;  %1129 = vmatprep.subr.bf16.mxu0 %v2720_v0 }
  0x30   : > { %755 = vrot.lane.b32.xlu1 %v2374_v3, %s2722_s22  ;;  %v628_v45 = vrot.slane %v627_v32, 4  ;;  %v859_v48 = vshll.u32 %v506_v30, 16  ;;  %v641_v50 = vor.u32 %v640_v41, %v637_v39  ;;  %v649_v51 = vshrl.u32 %v2964_v37, 16  ;;  %v3006_v10 = vld [vmem:[%s2869_s15 + $0xb8] sm:$0xf] }
  0x31   : > { %v652_v52 = vshll.u32 %v2964_v37, 16  ;;  %931 = vrot.lane.b32.xlu0 %v2381_v17, %s2727_s25  ;;  %v848_v54 = vsel %vm2922_vm3, %v843_v43, %v847_v46  ;;  %v2386_v57 = vcombine.low %v2942_v13, %v2964_v37  ;;  %v2390_v61 = vcombine.low %v2910_v40, %v2967_v38  ;;  %v508_v17 = vld [vmem:[%s2869_s15 + $0xb4] sm:$0x1]  ;;  %v510_v18 = vld [vmem:[%s2869_s15 + $0xbc] sm:$0x1] }
  0x32   : > { %v633_v53 = vsel %vm2922_vm3, %v628_v45, %v632_v34  ;;  %v861_v55 = vrot.slane %v859_v48, 5  ;;  %v642_v59 = vrot.slane %v641_v50, 4  ;;  %v651_v63 = vrot.slane %v649_v51, 4  ;;  %1130 = vmatpush1.bf16.msra.mxu0 %v2630_v1  ;;  %v3019_v31 = vld [vmem:[%s2869_s15 + $0x30] sm:$0xf] }
  0x33   : > { %v2393_v60 = vcombine.low %v2935_v9, %v633_v53  ;;  %v654_v3 = vrot.slane %v652_v52, 5  ;;  %v658_v4 = vshll.u32 %v481_v44, 16  ;;  %v663_v5 = vshrl.u32 %v2972_v49, 16  ;;  %v485_v36 = vld [vmem:[%s2869_s15 + $0x34] sm:$0x1] }
  0x34   : > { %v862_v2 = vsel %vm2922_vm3, %v857_v47, %v861_v55  ;;  %v647_v40 = vsel %vm2922_vm3, %v642_v59, %v646_v42  ;;  %v666_v8 = vshll.u32 %v2972_v49, 16  ;;  %v672_v9 = vshll.u32 %v483_v58, 16  ;;  %v3029_v47 = vld [vmem:[%s2869_s15 + $0x38] sm:$0xf]  ;;  %v487_v51 = vld [vmem:[%s2869_s15 + $0x3c] sm:$0x1] }
  0x35   : > { %1017 = vst.msk [vmem:[#allocation2 + $0x8] sm:$0xff] %vm547_vm2, %v2393_v60  ;;  %v2382_v7 = vcombine.low %v848_v54, %v862_v2  ;;  %v2370_v11 = vcombine.low %v633_v53, %v647_v40  ;;  %v655_v12 = vor.u32 %v654_v3, %v651_v63  ;;  %v660_v14 = vrot.slane %v658_v4, 5  ;;  %v3040_v52 = vld [vmem:[%s2869_s15 + $0x40] sm:$0xf]  ;;  %v489_v58 = vld [vmem:[%s2869_s15 + $0x44] sm:$0x1] }
  0x36   : > { %v665_v15 = vrot.slane %v663_v5, 4  ;;  %v2367_v0 = vcombine.low %v2967_v38, %v2989_v62  ;;  %v668_v19 = vrot.slane %v666_v8, 5  ;;  %v674_v20 = vrot.slane %v672_v9, 5  ;;  %v2618_v54 = vld [vmem:[%s2869_s15 + $0xf8] ss:$8 sps:$4 sm:$0xff]  }
  0x37   : > { %933 = vrot.lane.b32.xlu1 %v2382_v7, %s2727_s25  ;;  %v864_v21 = vshrl.u32 %v2998_v6, 16  ;;  %718 = vrot.lane.b32.xlu0 %v2370_v11, %s3588_s24  ;;  %v656_v22 = vrot.slane %v655_v12, 4  ;;  %v867_v23 = vshll.u32 %v2998_v6, 16  ;;  %v878_v24 = vshrl.u32 %v3006_v10, 16  ;;  %v3046_v60 = vld [vmem:[%s2869_s15 + $0xc0] sm:$0xf] }
  0x38   : > { %v881_v26 = vshll.u32 %v3006_v10, 16  ;;  %v669_v27 = vor.u32 %v668_v19, %v665_v15  ;;  %v873_v29 = vshll.u32 %v508_v17, 16  ;;  %v887_v30 = vshll.u32 %v510_v18, 16  ;;  %v3051_v4 = vld [vmem:[%s2869_s15 + $0xc8] sm:$0xf] }
  0x39   : > { %v866_v28 = vrot.slane %v864_v21, 4  ;;  %v661_v33 = vsel %vm2922_vm3, %v656_v22, %v660_v14  ;;  %v869_v32 = vrot.slane %v867_v23, 5  ;;  %v880_v34 = vrot.slane %v878_v24, 4  ;;  %v512_v18 = vld [vmem:[%s2869_s15 + $0xc4] sm:$0x1] }
  0x3a   : > { %v883_v35 = vrot.slane %v881_v26, 5  ;;  %v670_v38 = vrot.slane %v669_v27, 4  ;;  %v2394_v39 = vcombine.low %v647_v40, %v661_v33  ;;  %v875_v41 = vrot.slane %v873_v29, 5  ;;  %v496_v19 = vld [vmem:[%s2869_s15 + $0x78] sm:$0xf] }
  0x3b   : > { %979 = vrot.lane.b32.xlu1 %v2390_v61, %s2723_s28  ;;  %v889_v42 = vrot.slane %v887_v30, 5  ;;  %956 = vrot.lane.b32.xlu0 %v2386_v57, %s2725_s20  ;;  %v870_v43 = vor.u32 %v869_v32, %v866_v28  ;;  %v677_v45 = vshrl.u32 %v3019_v31, 16  ;;  %v680_v46 = vshll.u32 %v3019_v31, 16 }
  0x3c   : > { %v884_v44 = vor.u32 %v883_v35, %v880_v34  ;;  %v3033_v48 = vsel %vm2922_vm3, %v670_v38, %v674_v20  ;;  %1018 = vst.msk [vmem:[#allocation2 + $0x18] sm:$0xff] %vm547_vm2, %v2394_v39  ;;  %v2375_v50 = vcombine.low %v2998_v6, %v3006_v10  ;;  %v1022_v61 = vld [vmem:[#allocation2 + $0x8] sm:$0xff]  ;;  %v686_v1 = vshll.u32 %v485_v36, 16  ;;  %v497_v20 = vld [vmem:[%s2869_s15 + $0x80] sm:$0xf] }
  0x3d   : > { %v2371_v53 = vcombine.low %v661_v33, %v3033_v48  ;;  %v871_v55 = vrot.slane %v870_v43, 4  ;;  %v679_v59 = vrot.slane %v677_v45, 4  ;;  %v682_v63 = vrot.slane %v680_v46, 5  ;;  %2406 = vmatprep.mubr.msk.bf16.mxu0 %vm547_vm2, %v1022_v61 }
  0x3e   : > { %v885_v57 = vrot.slane %v884_v44, 4  ;;  %v691_v2 = vshrl.u32 %v3029_v47, 16  ;;  %v694_v3 = vshll.u32 %v3029_v47, 16  ;;  %v700_v40 = vshll.u32 %v487_v51, 16 }
  0x3f   : > { %576 = vrot.lane.b32.xlu0 %v2367_v0, %s2721_s19  ;;  %720 = vrot.lane.b32.xlu1 %v2371_v53, %s3588_s24  ;;  %v876_v5 = vsel %vm2922_vm3, %v871_v55, %v875_v41  ;;  %v995_v7 = vshrl.u32 %v3040_v52, 16  ;;  %v2387_v8 = vcombine.low %v2972_v49, %v3019_v31  ;;  %v683_v9 = vor.u32 %v682_v63, %v679_v59  ;;  %v514_v0 = vld [vmem:[%s2869_s15 + $0xcc] sm:$0x1] }
  0x40   : > { %v890_v6 = vsel %vm2922_vm3, %v885_v57, %v889_v42  ;;  %v688_v10 = vrot.slane %v686_v1, 5  ;;  %v693_v11 = vrot.slane %v691_v2, 4  ;;  %v696_v14 = vrot.slane %v694_v3, 5 }
  0x41   : > { %v2383_v12 = vcombine.low %v876_v5, %v890_v6  ;;  %v997_v15 = vrot.slane %v995_v7, 4  ;;  %v998_v17 = vshll.u32 %v3040_v52, 16  ;;  %v684_v21 = vrot.slane %v683_v9, 4  ;;  %v3102_v5 = vld [vmem:[%s2869_s15 + $0x108] ss:$8 sps:$4 sm:$0xff]  }
  0x42   : > { %v702_v22 = vrot.slane %v700_v40, 5  ;;  %v1004_v23 = vshll.u32 %v489_v58, 16  ;;  %v892_v24 = vshrl.u32 %v3046_v60, 16  ;;  %v697_v26 = vor.u32 %v696_v14, %v693_v11 }
  0x43   : > { %757 = vrot.lane.b32.xlu0 %v2375_v50, %s2722_s22  ;;  %794 = vrot.lane.b32.xlu1 %v2618_v54, %s2724_s18  ;;  %v1000_v27 = vrot.slane %v998_v17, 5  ;;  %v895_v28 = vshll.u32 %v3046_v60, 16  ;;  %v906_v29 = vshrl.u32 %v3051_v4, 16  ;;  %v689_v30 = vsel %vm2922_vm3, %v684_v21, %v688_v10 }
  0x44   : > { %v1006_v33 = vrot.slane %v1004_v23, 5  ;;  %v894_v32 = vrot.slane %v892_v24, 4  ;;  %v909_v34 = vshll.u32 %v3051_v4, 16  ;;  %v698_v35 = vrot.slane %v697_v26, 4 }
  0x45   : > { %v1001_v36 = vor.u32 %v1000_v27, %v997_v15  ;;  %v2395_v38 = vcombine.low %v3033_v48, %v689_v30  ;;  %v897_v39 = vrot.slane %v895_v28, 5  ;;  %v908_v41 = vrot.slane %v906_v29, 4  ;;  %v1024_v15 = vld [vmem:[#allocation2 + $0x18] sm:$0xff] }
  0x46   : > { %v911_v42 = vrot.slane %v909_v34, 5  ;;  %v901_v43 = vshll.u32 %v512_v18, 16  ;;  %v915_v44 = vshll.u32 %v514_v0, 16  ;;  %v2391_v45 = vcombine.low %v2989_v62, %v496_v19 }
  0x47   : > { %935 = vrot.lane.b32.xlu0 %v2383_v12, %s2727_s25  ;;  %958 = vrot.lane.b32.xlu1 %v2387_v8, %s2725_s20  ;;  %v2368_v46 = vcombine.low %v496_v19, %v497_v20  ;;  %v1002_v50 = vrot.slane %v1001_v36, 4  ;;  %1019 = vst.msk [vmem:[#allocation2 + $0x28] sm:$0xff] %vm547_vm2, %v2395_v38  ;;  %v898_v51 = vor.u32 %v897_v39, %v894_v32 }
  0x48   : > { %v703_v53 = vsel %vm2922_vm3, %v698_v35, %v702_v22  ;;  %v903_v48 = vrot.slane %v901_v43, 5  ;;  %v912_v54 = vor.u32 %v911_v42, %v908_v41  ;;  %v917_v55 = vrot.slane %v915_v44, 5 }
  0x49   : > { %v1007_v57 = vsel %vm2922_vm3, %v1002_v50, %v1006_v33  ;;  %v899_v58 = vrot.slane %v898_v51, 4  ;;  %v2362_v62 = vcombine.low %v2895_v25, %v2942_v13  ;;  %v2372_v63 = vcombine.low %v689_v30, %v703_v53  ;;  %v2631_v50 = vld [vmem:[%s3573_s4 + $0x40] sm:$0xff]  }
  0x4a   : > { %v2396_v59 = vcombine.low %v703_v53, %v1007_v57  ;;  %v913_v61 = vrot.slane %v912_v54, 4  ;;  %v2376_v1 = vcombine.low %v3046_v60, %v3051_v4  ;;  %v2363_v2 = vcombine.low %v2964_v37, %v2972_v49  ;;  %v498_v60 = vld [vmem:[%s2869_s15 + $0x88] sm:$0xf]  ;;  %2453 = vmatprep.subr.bf16.mxu1 %v2631_v50  ;;  %v3202_v53 = vld [vmem:[%s3571_s2] ss:$0 sm:$0xff] }
  0x4b   : > { %981 = vrot.lane.b32.xlu0 %v2391_v45, %s2723_s28  ;;  %578 = vrot.lane.b32.xlu1 %v2368_v46, %s2721_s19  ;;  %549 = vst.msk [vmem:[#allocation2 + $0x10] sm:$0xff] %vm547_vm2, %v2362_v62  ;;  %v904_v25 = vsel %vm2922_vm3, %v899_v58, %v903_v48  ;;  %v2364_v3 = vcombine.low %v3019_v31, %v3029_v47  ;;  %v2728_v41 = vmov 0.0  }
  0x4c   : > { %1020 = vst.msk [vmem:[#allocation2 + $0x38] sm:$0xff] %vm547_vm2, %v2396_v59  ;;  %v918_v13 = vsel %vm2922_vm3, %v913_v61, %v917_v55  ;;  %550 = vst.msk [vmem:[#allocation2 + $0x20] sm:$0xff] %vm547_vm2, %v2363_v2  ;;  %v2388_v56 = vcombine.low %v3029_v47, %v3040_v52  ;;  %v2392_v49 = vcombine.low %v497_v20, %v498_v60  ;;  %v3207_v55 = vld [vmem:[%s3572_s3] ss:$0 sm:$0xff]  ;;  %v2633_v61 = vld [vmem:[%s3573_s4 + $0x48] sm:$0xff]  }
  0x4d   : > { %551 = vst.msk [vmem:[#allocation2 + $0x30] sm:$0xff] %vm547_vm2, %v2364_v3  ;;  %v2384_v37 = vcombine.low %v904_v25, %v918_v13  ;;  %v2632_v59 = vld [vmem:[%s3573_s4] sm:$0xff]   ;;  %v2634_v3 = vld [vmem:[%s3573_s4 + $0x8] sm:$0xff]   ;;  %v2635_v60 = vld [vmem:[%s3573_s4 + $0x50] sm:$0xff]  }
  0x4e   : > { %v1026_v22 = vld [vmem:[#allocation2 + $0x28] sm:$0xff]  ;;  %1220 = vst.msk [vmem:[#allocation3 + $0x10] sm:$0xff] %vm1216_vm11, %v2728_v41  ;;  %1217 = vst.msk [vmem:[#allocation3] sm:$0xff] %vm1216_vm11, %v2728_v41  ;;  %2454 = vmatpush3.bf16.msra.mxu1 %v2632_v59 }
  0x4f   : > { %722 = vrot.lane.b32.xlu0 %v2372_v63, %s3588_s24  ;;  %759 = vrot.lane.b32.xlu1 %v2376_v1, %s2722_s22  ;;  %1221 = vst.msk [vmem:[#allocation3 + $0x18] sm:$0x3] %vm1218_vm12, %v2728_v41  ;;  %1219 = vst.msk [vmem:[#allocation3 + $0x8] sm:$0x3] %vm1218_vm12, %v2728_v41  ;;  %s3598_s22 = smov 32  }
  0x50   : > { %1222 = vst.msk [vmem:[#allocation3 + $0x20] sm:$0xff] %vm1216_vm11, %v2728_v41  ;;  %1224 = vst.msk [vmem:[#allocation3 + $0x30] sm:$0xff] %vm1216_vm11, %v2728_v41  ;;  %2455 = vmatprep.subr.bf16.mxu1 %v2633_v61 }
  0x51   : > { %1223 = vst.msk [vmem:[#allocation3 + $0x28] sm:$0x3] %vm1218_vm12, %v2728_v41  ;;  %1225 = vst.msk [vmem:[#allocation3 + $0x38] sm:$0x3] %vm1218_vm12, %v2728_v41 }
  0x52   : > { %1226 = vst.msk [vmem:[#allocation3 + $0x40] sm:$0xff] %vm1216_vm11, %v2728_v41  ;;  %1228 = vst.msk [vmem:[#allocation3 + $0x50] sm:$0xff] %vm1216_vm11, %v2728_v41  ;;  %2456 = vmatpush3.bf16.msra.mxu1 %v2634_v3 }
  0x53   : > { %796 = vrot.lane.b32.xlu0 %v3102_v5, %s2724_s18  ;;  %937 = vrot.lane.b32.xlu1 %v2384_v37, %s2727_s25  ;;  %v1028_v33 = vld [vmem:[#allocation2 + $0x38] sm:$0xff]  ;;  %1227 = vst.msk [vmem:[#allocation3 + $0x48] sm:$0x3] %vm1218_vm12, %v2728_v41  ;;  %1229 = vst.msk [vmem:[#allocation3 + $0x58] sm:$0x3] %vm1218_vm12, %v2728_v41 }
  0x54   : > { %1230 = vst.msk [vmem:[#allocation3 + $0x60] sm:$0xff] %vm1216_vm11, %v2728_v41  ;;  %1232 = vst.msk [vmem:[#allocation3 + $0x70] sm:$0xff] %vm1216_vm11, %v2728_v41  ;;  %2457 = vmatprep.subr.bf16.mxu1 %v2635_v60 }
  0x55   : > { %1231 = vst.msk [vmem:[#allocation3 + $0x68] sm:$0x3] %vm1218_vm12, %v2728_v41  ;;  %1233 = vst.msk [vmem:[#allocation3 + $0x78] sm:$0x3] %vm1218_vm12, %v2728_v41  ;;  %v1247_v46 = vld [vmem:[#allocation3] sm:$0xff] }
  0x56   : > { %1234 = vst.msk [vmem:[#allocation3 + $0x80] sm:$0xff] %vm1216_vm11, %v2728_v41  ;;  %1236 = vst.msk [vmem:[#allocation3 + $0x90] sm:$0xff] %vm1216_vm11, %v2728_v41  ;;  %v1263_v42 = vld [vmem:[#allocation3 + $0x1] sm:$0xff] }
  0x57   : > { %960 = vrot.lane.b32.xlu0 %v2388_v56, %s2725_s20  ;;  %983 = vrot.lane.b32.xlu1 %v2392_v49, %s2723_s28  ;;  %1235 = vst.msk [vmem:[#allocation3 + $0x88] sm:$0x3] %vm1218_vm12, %v2728_v41  ;;  %1237 = vst.msk [vmem:[#allocation3 + $0x98] sm:$0x3] %vm1218_vm12, %v2728_v41  ;;  %v1312_v44 = vld [vmem:[#allocation3 + $0x2] sm:$0xff]  ;;  %s461_s28 = sand.u32 1, %s2710_s30  }
  0x58   : > { %1255 = vst.msk [vmem:[#allocation4] sm:$0xff] %vm1216_vm11, %v1247_v46  ;;  %s2358_s25 = sshll.u32 %s461_s28, 6  ;;  %s3528_s17 = scalar_lea.sflag [#allocation6], %s461_s28 }
  0x59   : > { %s463_s27 = scalar_lea.vmem [#allocation5], %s2358_s25 }
  0x5a   : > { %s2292_s19 = sshll.u32 %s463_s27, 4  ;;  %s3516_s19 = int_to_ptr.vmem [resolvable:$true] %s2292_s19 }
  0x5b   : > { %1279 = vrot.lane.b32.xlu0 %v1263_v42, %s3588_s24 }
  0x5e   : > { %v1530_v43 = vld [vmem:[#allocation3 + $0x91] sm:$0xff] }
  0x5f   : > { %1328 = vrot.lane.b32.xlu0 %v1312_v44, %s2724_s18  ;;  %v1578_v45 = vld [vmem:[#allocation3 + $0x92] sm:$0xff] }
  0x60   : > { %1586 = vst.msk [vmem:[#allocation4 + $0xb8] sm:$0xff] %vm1216_vm11, %v1578_v45  ;;  %v2646_v45 = vld [vmem:[%s3573_s4 + $0x38] sm:$0xff]  }
  0x91   : > { %v573_v31 = vpop.permute.xlu0 %572 }
  0x92   : > { %585 = vst.msk [vmem:[#allocation2] sm:$0xff] %vm584_vm4, %v573_v31  ;;  %v754_v4 = vpop.permute.xlu1 %753 }
  0x95   : > { %v978_v6 = vpop.permute.xlu0 %977 }
  0x96   : > { %v791_v40 = vpop.permute.xlu1 %790 }
  0x99   : > { %v793_v8 = vpop.permute.xlu0 %792 }
  0x9a   : > { %v955_v7 = vpop.permute.xlu1 %954 }
  0x9e   : > { %v575_v9 = vpop.permute.xlu1 %574 }
  0x9f   : > { %586 = vst.msk [vmem:[#allocation2 + $0x10] sm:$0xff] %vm584_vm4, %v575_v9  ;;  %v717_v47 = vpop.permute.xlu0 %716 }
  0xa0   : > { %729 = vst.msk [vmem:[#allocation2] sm:$0xff] %vm728_vm5, %v717_v47 }
  0xa1   : > { %766 = vst.msk [vmem:[#allocation2] sm:$0xff] %vm765_vm6, %v754_v4  ;;  %v2636_v4 = vld [vmem:[%s3573_s4 + $0x10] sm:$0xff]  }
  0xa2   : > { %803 = vst.msk [vmem:[#allocation2] sm:$0xff] %vm802_vm7, %v791_v40  ;;  %v756_v52 = vpop.permute.xlu1 %755  ;;  %2458 = vmatpush3.bf16.msra.mxu1 %v2636_v4 }
  0xa3   : > { %v932_v10 = vpop.permute.xlu0 %931 }
  0xa4   : > { %944 = vst.msk [vmem:[#allocation2] sm:$0xff] %vm943_vm8, %v932_v10 }
  0xa5   : > { %967 = vst.msk [vmem:[#allocation2] sm:$0xff] %vm966_vm9, %v955_v7 }
  0xa6   : > { %990 = vst.msk [vmem:[#allocation2] sm:$0xff] %vm989_vm10, %v978_v6  ;;  %v2637_v6 = vld [vmem:[%s3573_s4 + $0x58] sm:$0xff]  }
  0xa7   : > { %2459 = vmatprep.subr.bf16.mxu1 %v2637_v6 }
  0xa9   : > { %v934_v11 = vpop.permute.xlu1 %933  ;;  %v719_v12 = vpop.permute.xlu0 %718 }
  0xaa   : > { %730 = vst.msk [vmem:[#allocation2 + $0x10] sm:$0xff] %vm728_vm5, %v719_v12 }
  0xab   : > { %767 = vst.msk [vmem:[#allocation2 + $0x10] sm:$0xff] %vm765_vm6, %v756_v52 }
  0xac   : > { %804 = vst.msk [vmem:[#allocation2 + $0x10] sm:$0xff] %vm802_vm7, %v793_v8 }
  0xad   : > { %v980_v14 = vpop.permute.xlu1 %979  ;;  %945 = vst.msk [vmem:[#allocation2 + $0x10] sm:$0xff] %vm943_vm8, %v934_v11  ;;  %v957_v17 = vpop.permute.xlu0 %956  ;;  %v1021_v18 = vld [vmem:[#allocation2] sm:$0xff] }
  0xae   : > { %968 = vst.msk [vmem:[#allocation2 + $0x10] sm:$0xff] %vm966_vm9, %v957_v17  ;;  %1146 = vmatmul.mubr.bf16.vlgmr.msra.gmra.mrb[0].mxu0 %v1021_v18 }
  0xaf   : > { %991 = vst.msk [vmem:[#allocation2 + $0x10] sm:$0xff] %vm989_vm10, %v980_v14  ;;  %2407 = vmatprep.mubr.msk.bf16.mxu0 %vm547_vm2, %v1024_v15  ;;  %v2638_v14 = vld [vmem:[%s3573_s4 + $0x18] sm:$0xff]   ;;  %v2639_v15 = vld [vmem:[%s3573_s4 + $0x60] sm:$0xff]  }
  0xb0   : > { %2460 = vmatpush3.bf16.msra.mxu1 %v2638_v14 }
  0xb1   : > { %v577_v0 = vpop.permute.xlu0 %576  ;;  %v721_v19 = vpop.permute.xlu1 %720  ;;  %2461 = vmatprep.subr.bf16.mxu1 %v2639_v15 }
  0xb2   : > { %587 = vst.msk [vmem:[#allocation2 + $0x20] sm:$0xff] %vm584_vm4, %v577_v0 }
  0xb3   : > { %731 = vst.msk [vmem:[#allocation2 + $0x20] sm:$0xff] %vm728_vm5, %v721_v19 }
  0xb5   : > { %v758_v20 = vpop.permute.xlu0 %757  ;;  %v795_v21 = vpop.permute.xlu1 %794 }
  0xb6   : > { %768 = vst.msk [vmem:[#allocation2 + $0x20] sm:$0xff] %vm765_vm6, %v758_v20  ;;  %v1023_v23 = vld [vmem:[#allocation2 + $0x10] sm:$0xff]  ;;  %v2640_v20 = vld [vmem:[%s3573_s4 + $0x20] sm:$0xff]  }
  0xb7   : > { %805 = vst.msk [vmem:[#allocation2 + $0x20] sm:$0xff] %vm802_vm7, %v795_v21  ;;  %1154 = vmatmul.mubr.bf16.gmra.mrb[4].mxu0 %v1023_v23  ;;  %v2641_v21 = vld [vmem:[%s3573_s4 + $0x68] sm:$0xff]   ;;  %2462 = vmatpush3.bf16.msra.mxu1 %v2640_v20  ;;  %v2643_v23 = vld [vmem:[%s3573_s4 + $0x70] sm:$0xff]  }
  0xb8   : > { %2408 = vmatprep.mubr.msk.bf16.mxu0 %vm547_vm2, %v1026_v22  ;;  %2463 = vmatprep.subr.bf16.mxu1 %v2641_v21  ;;  %v2642_v22 = vld [vmem:[%s3573_s4 + $0x28] sm:$0xff]  }
  0xb9   : > { %v936_v24 = vpop.permute.xlu0 %935  ;;  %v959_v26 = vpop.permute.xlu1 %958 }
  0xba   : > { %946 = vst.msk [vmem:[#allocation2 + $0x20] sm:$0xff] %vm943_vm8, %v936_v24 }
  0xbb   : > { %969 = vst.msk [vmem:[#allocation2 + $0x20] sm:$0xff] %vm966_vm9, %v959_v26  ;;  %2464 = vmatpush3.bf16.msra.mxu1 %v2642_v22 }
  0xbc   : > { %2465 = vmatprep.subr.bf16.mxu1 %v2643_v23 }
  0xbd   : > { %v982_v27 = vpop.permute.xlu0 %981  ;;  %v579_v28 = vpop.permute.xlu1 %578 }
  0xbe   : > { %992 = vst.msk [vmem:[#allocation2 + $0x20] sm:$0xff] %vm989_vm10, %v982_v27 }
  0xbf   : > { %588 = vst.msk [vmem:[#allocation2 + $0x30] sm:$0xff] %vm584_vm4, %v579_v28 }
  0xc1   : > { %v723_v29 = vpop.permute.xlu0 %722  ;;  %v760_v30 = vpop.permute.xlu1 %759 }
  0xc2   : > { %732 = vst.msk [vmem:[#allocation2 + $0x30] sm:$0xff] %vm728_vm5, %v723_v29 }
  0xc3   : > { %769 = vst.msk [vmem:[#allocation2 + $0x30] sm:$0xff] %vm765_vm6, %v760_v30 }
  0xc5   : > { %v1025_v32 = vld [vmem:[#allocation2 + $0x20] sm:$0xff]  ;;  %v797_v34 = vpop.permute.xlu0 %796  ;;  %v938_v35 = vpop.permute.xlu1 %937 }
  0xc6   : > { %1162 = vmatmul.mubr.bf16.gmra.mrb[8].mxu0 %v1025_v32  ;;  %806 = vst.msk [vmem:[#allocation2 + $0x30] sm:$0xff] %vm802_vm7, %v797_v34 }
  0xc7   : > { %947 = vst.msk [vmem:[#allocation2 + $0x30] sm:$0xff] %vm943_vm8, %v938_v35  ;;  %2409 = vmatprep.mubr.msk.bf16.mxu0 %vm547_vm2, %v1028_v33 }
  0xc9   : > { %v961_v36 = vpop.permute.xlu0 %960  ;;  %v984_v38 = vpop.permute.xlu1 %983 }
  0xca   : > { %970 = vst.msk [vmem:[#allocation2 + $0x30] sm:$0xff] %vm966_vm9, %v961_v36  ;;  %v2644_v36 = vld [vmem:[%s3573_s4 + $0x30] sm:$0xff]  }
  0xcb   : > { %993 = vst.msk [vmem:[#allocation2 + $0x30] sm:$0xff] %vm989_vm10, %v984_v38  ;;  %v2645_v38 = vld [vmem:[%s3573_s4 + $0x78] sm:$0xff]   ;;  %2466 = vmatpush3.bf16.msra.mxu1 %v2644_v36 }
  0xcc   : > { %2467 = vmatprep.subr.bf16.mxu1 %v2645_v38 }
  0xcd   : > { %v1280_v51 = vpop.permute.xlu0 %1279 }
  0xce   : > { %1304 = vst.msk [vmem:[#allocation4] sm:$0xff] %vm1303_vm13, %v1280_v51 }
  0xcf   : > { %2468 = vmatpush3.bf16.msra.mxu1 %v2646_v45 }
  0xd1   : > { %v1329_v48 = vpop.permute.xlu0 %1328 }
  0xd2   : > { %v1027_v39 = vld [vmem:[#allocation2 + $0x30] sm:$0xff]  ;;  %1353 = vst.msk [vmem:[#allocation4] sm:$0xff] %vm1352_vm14, %v1329_v48 }
  0xd3   : > { %1170 = vmatmul.mubr.bf16.gmra.mrb[12].mxu0 %v1027_v39 }
  0xd4   : > { %2525 = vmatprep.mubr.msk.bf16.mxu0 %vm547_vm2, %v2885_v16  ;;  %v1482_v16 = vld [vmem:[#allocation3 + $0x90] sm:$0xff] }
  0xd5   : > { %1505 = vrot.lane.b32.xlu1 %v1482_v16, %s2724_s18 }
  0xd9   : > { %1553 = vrot.lane.b32.xlu1 %v1530_v43, %s2725_s20 }
 0x147   : > { %v3361_v6 = vpop.permute.xlu1 %1505 }
 0x181   : > { %v1147_v54 = vpop.f32.mrb[0].mxu0 }
 0x182   : > { %v1185_v57 = vmul.f32 %v3202_v53, %v1147_v54  ;;  %v1149_v58 = vpop.f32.mrb[1].mxu0 }
 0x183   : > { %v1150_v62 = vpop.f32.mrb[2].mxu0 }
 0x184   : > { %v1200_v63 = vadd.f32 %v3207_v55, %v1185_v57  ;;  %v1186_v1 = vmul.f32 %v3202_v53, %v1150_v62  ;;  %v1152_v2 = vpop.f32.mrb[3].mxu0 }
 0x186   : > { %v1208_v25 = vmax.f32 %v1200_v63, 0.0  ;;  %v1201_v13 = vadd.f32 %v3207_v55, %v1186_v1 }
 0x188   : > { %1239 = vst.msk [vmem:[#allocation3 + $0x11] sm:$0xff] %vm1216_vm11, %v1208_v25  ;;  %v1209_v37 = vmax.f32 %v1201_v13, 0.0 }
 0x18a   : > { %1240 = vst.msk [vmem:[#allocation3 + $0x21] sm:$0xff] %vm1216_vm11, %v1209_v37  ;;  %v1155_v56 = vpop.f32.mrb[4].mxu0 }
 0x18b   : > { %v1187_v49 = vmul.f32 %v3202_v53, %v1155_v56  ;;  %v1157_v31 = vpop.f32.mrb[5].mxu0 }
 0x18c   : > { %v1158_v40 = vpop.f32.mrb[6].mxu0  ;;  %v3342_v31 = vld [vmem:[%s3573_s4 + $0x80] sm:$0xff]  }
 0x18d   : > { %v1202_v7 = vadd.f32 %v3207_v55, %v1187_v49  ;;  %v1188_v8 = vmul.f32 %v3202_v53, %v1158_v40  ;;  %v1160_v9 = vpop.f32.mrb[7].mxu0  ;;  %2511 = vmatprep.subr.bf16.mxu1 %v3342_v31  ;;  %v3363_v40 = vpop.permute.xlu1 %1553 }
 0x18f   : > { %v1210_v47 = vmax.f32 %v1202_v7, 0.0  ;;  %v1426_v52 = vld [vmem:[#allocation3 + $0x12] sm:$0xff]  ;;  %v1203_v11 = vadd.f32 %v3207_v55, %v1188_v8 }
 0x190   : > { %v1264_v10 = vld [vmem:[#allocation3 + $0x11] sm:$0xff]  ;;  %1442 = vrot.lane.b32.xlu0 %v1426_v52, %s3588_s24 }
 0x191   : > { %v1361_v12 = vld [vmem:[#allocation3 + $0x10] sm:$0xff]  ;;  %1281 = vrot.lane.b32.xlu1 %v1264_v10, %s3588_s24  ;;  %1418 = vst.msk [vmem:[#allocation4 + $0x8] sm:$0xff] %vm1216_vm11, %v1264_v10  ;;  %1241 = vst.msk [vmem:[#allocation3 + $0x31] sm:$0xff] %vm1216_vm11, %v1210_v47  ;;  %v1211_v17 = vmax.f32 %v1203_v11, 0.0  ;;  %v1475_v18 = vld [vmem:[#allocation3 + $0x20] sm:$0xff] }
 0x192   : > { %1256 = vst.msk [vmem:[#allocation4 + $0x18] sm:$0xff] %vm1216_vm11, %v1361_v12  ;;  %v1427_v0 = vld [vmem:[#allocation3 + $0x22] sm:$0xff]  ;;  %1257 = vst.msk [vmem:[#allocation4 + $0x30] sm:$0xff] %vm1216_vm11, %v1475_v18 }
 0x193   : > { %v1523_v19 = vld [vmem:[#allocation3 + $0x21] sm:$0xff]  ;;  %1579 = vst.msk [vmem:[#allocation4 + $0x10] sm:$0xff] %vm1216_vm11, %v1427_v0  ;;  %1242 = vst.msk [vmem:[#allocation3 + $0x41] sm:$0xff] %vm1216_vm11, %v1211_v17 }
 0x194   : > { %1419 = vst.msk [vmem:[#allocation4 + $0x20] sm:$0xff] %vm1216_vm11, %v1523_v19  ;;  %1377 = vrot.lane.b32.xlu0 %v1361_v12, %s2725_s20 }
 0x195   : > { %1330 = vrot.lane.b32.xlu1 %v1426_v52, %s2724_s18 }
 0x198   : > { %1491 = vrot.lane.b32.xlu0 %v1475_v18, %s2724_s18  ;;  %v1476_v24 = vld [vmem:[#allocation3 + $0x30] sm:$0xff] }
 0x199   : > { %1444 = vrot.lane.b32.xlu1 %v1427_v0, %s3598_s22  ;;  %v1524_v26 = vld [vmem:[#allocation3 + $0x31] sm:$0xff]  ;;  %v1163_v28 = vpop.f32.mrb[8].mxu0  ;;  %1258 = vst.msk [vmem:[#allocation4 + $0x48] sm:$0xff] %vm1216_vm11, %v1476_v24 }
 0x19a   : > { %v1428_v27 = vld [vmem:[#allocation3 + $0x32] sm:$0xff]  ;;  %1420 = vst.msk [vmem:[#allocation4 + $0x38] sm:$0xff] %vm1216_vm11, %v1524_v26  ;;  %v3272_v29 = vld [vmem:[#allocation3 + $0x42] sm:$0xff]  ;;  %v1189_v30 = vmul.f32 %v3202_v53, %v1163_v28  ;;  %v1165_v33 = vpop.f32.mrb[9].mxu0 }
 0x19b   : > { %1580 = vst.msk [vmem:[#allocation4 + $0x28] sm:$0xff] %vm1216_vm11, %v1428_v27  ;;  %v1477_v32 = vld [vmem:[#allocation3 + $0x40] sm:$0xff]  ;;  %1581 = vst.msk [vmem:[#allocation4 + $0x40] sm:$0xff] %vm1216_vm11, %v3272_v29  ;;  %v1166_v35 = vpop.f32.mrb[10].mxu0 }
 0x19c   : > { %v3275_v34 = vld [vmem:[#allocation3 + $0x41] sm:$0xff]  ;;  %1259 = vst.msk [vmem:[#allocation4 + $0x60] sm:$0xff] %vm1216_vm11, %v1477_v32  ;;  %v1204_v39 = vadd.f32 %v3207_v55, %v1189_v30  ;;  %1539 = vrot.lane.b32.xlu0 %v1523_v19, %s2725_s20  ;;  %v1190_v16 = vmul.f32 %v3202_v53, %v1166_v35  ;;  %v1168_v42 = vpop.f32.mrb[11].mxu0 }
 0x19d   : > { %1421 = vst.msk [vmem:[#allocation4 + $0x50] sm:$0xff] %vm1216_vm11, %v3275_v34  ;;  %1379 = vrot.lane.b32.xlu1 %v1475_v18, %s2725_s20 }
 0x19e   : > { %v1212_v43 = vmax.f32 %v1204_v39, 0.0  ;;  %v1205_v44 = vadd.f32 %v3207_v55, %v1190_v16 }
 0x1a0   : > { %1243 = vst.msk [vmem:[#allocation3 + $0x51] sm:$0xff] %vm1216_vm11, %v1212_v43  ;;  %1283 = vrot.lane.b32.xlu0 %v1523_v19, %s3598_s22  ;;  %v1213_v46 = vmax.f32 %v1205_v44, 0.0 }
 0x1a1   : > { %1493 = vrot.lane.b32.xlu1 %v1476_v24, %s2724_s18 }
 0x1a2   : > { %1244 = vst.msk [vmem:[#allocation3 + $0x61] sm:$0xff] %vm1216_vm11, %v1213_v46 }
 0x1a4   : > { %1332 = vrot.lane.b32.xlu0 %v1427_v0, %s2724_s18 }
 0x1a5   : > { %1541 = vrot.lane.b32.xlu1 %v1524_v26, %s2725_s20 }
 0x1a6   : > { %v1171_v50 = vpop.f32.mrb[12].mxu0 }
 0x1a7   : > { %v1574_v51 = vld [vmem:[#allocation3 + $0x52] sm:$0xff]  ;;  %v1191_v48 = vmul.f32 %v3202_v53, %v1171_v50  ;;  %v1173_v58 = vpop.f32.mrb[13].mxu0 }
 0x1a8   : > { %v1478_v54 = vld [vmem:[#allocation3 + $0x50] sm:$0xff]  ;;  %1582 = vst.msk [vmem:[#allocation4 + $0x58] sm:$0xff] %vm1216_vm11, %v1574_v51  ;;  %1446 = vrot.lane.b32.xlu0 %v1428_v27, %s3598_s22  ;;  %v1174_v62 = vpop.f32.mrb[14].mxu0 }
 0x1a9   : > { %v1526_v57 = vld [vmem:[#allocation3 + $0x51] sm:$0xff]  ;;  %1285 = vrot.lane.b32.xlu1 %v1524_v26, %s3598_s22  ;;  %1260 = vst.msk [vmem:[#allocation4 + $0x78] sm:$0xff] %vm1216_vm11, %v1478_v54  ;;  %v1206_v59 = vadd.f32 %v3207_v55, %v1191_v48  ;;  %v1192_v61 = vmul.f32 %v3202_v53, %v1174_v62  ;;  %v1176_v63 = vpop.f32.mrb[15].mxu0  ;;  %v1479_v1 = vld [vmem:[#allocation3 + $0x60] sm:$0xff] }
 0x1aa   : > { %1422 = vst.msk [vmem:[#allocation4 + $0x68] sm:$0xff] %vm1216_vm11, %v1526_v57  ;;  %v1431_v2 = vld [vmem:[#allocation3 + $0x62] sm:$0xff]  ;;  %1261 = vst.msk [vmem:[#allocation4 + $0x90] sm:$0xff] %vm1216_vm11, %v1479_v1 }
 0x1ab   : > { %v1527_v25 = vld [vmem:[#allocation3 + $0x61] sm:$0xff]  ;;  %1583 = vst.msk [vmem:[#allocation4 + $0x70] sm:$0xff] %vm1216_vm11, %v1431_v2  ;;  %v1214_v13 = vmax.f32 %v1206_v59, 0.0  ;;  %v1207_v3 = vadd.f32 %v3207_v55, %v1192_v61 }
 0x1ac   : > { %1423 = vst.msk [vmem:[#allocation4 + $0x80] sm:$0xff] %vm1216_vm11, %v1527_v25  ;;  %1381 = vrot.lane.b32.xlu0 %v1476_v24, %s2725_s20 }
 0x1ad   : > { %1334 = vrot.lane.b32.xlu1 %v1428_v27, %s2724_s18  ;;  %1245 = vst.msk [vmem:[#allocation3 + $0x71] sm:$0xff] %vm1216_vm11, %v1214_v13  ;;  %v1215_v53 = vmax.f32 %v1207_v3, 0.0 }
 0x1af   : > { %1246 = vst.msk [vmem:[#allocation3 + $0x81] sm:$0xff] %vm1216_vm11, %v1215_v53 }
 0x1b0   : > { %1495 = vrot.lane.b32.xlu0 %v1477_v32, %s2724_s18 }
 0x1b1   : > { %1448 = vrot.lane.b32.xlu1 %v3272_v29, %s3598_s22 }
 0x1b4   : > { %1543 = vrot.lane.b32.xlu0 %v3275_v34, %s2725_s20  ;;  %v1480_v55 = vld [vmem:[#allocation3 + $0x70] sm:$0xff] }
 0x1b5   : > { %1383 = vrot.lane.b32.xlu1 %v1477_v32, %s2725_s20  ;;  %v1528_v60 = vld [vmem:[#allocation3 + $0x71] sm:$0xff]  ;;  %1262 = vst.msk [vmem:[#allocation4 + $0xa8] sm:$0xff] %vm1216_vm11, %v1480_v55 }
 0x1b6   : > { %v1432_v37 = vld [vmem:[#allocation3 + $0x72] sm:$0xff]  ;;  %1424 = vst.msk [vmem:[#allocation4 + $0x98] sm:$0xff] %vm1216_vm11, %v1528_v60  ;;  %v1529_v56 = vld [vmem:[#allocation3 + $0x81] sm:$0xff] }
 0x1b7   : > { %1584 = vst.msk [vmem:[#allocation4 + $0x88] sm:$0xff] %vm1216_vm11, %v1432_v37  ;;  %v1433_v49 = vld [vmem:[#allocation3 + $0x82] sm:$0xff]  ;;  %1425 = vst.msk [vmem:[#allocation4 + $0xb0] sm:$0xff] %vm1216_vm11, %v1529_v56 }
 0x1b8   : > { %1585 = vst.msk [vmem:[#allocation4 + $0xa0] sm:$0xff] %vm1216_vm11, %v1433_v49  ;;  %1287 = vrot.lane.b32.xlu0 %v3275_v34, %s3598_s22  ;;  %v1481_v4 = vld [vmem:[#allocation3 + $0x80] sm:$0xff] }
 0x1b9   : > { %1497 = vrot.lane.b32.xlu1 %v1478_v54, %s2724_s18 }
 0x1bc   : > { %1336 = vrot.lane.b32.xlu0 %v3272_v29, %s2724_s18  ;;  %v2648_v29 = vld [vmem:[%s3573_s4 + $0x88] sm:$0xff]  }
 0x1bd   : > { %1545 = vrot.lane.b32.xlu1 %v1526_v57, %s2725_s20 }
 0x1c0   : > { %1450 = vrot.lane.b32.xlu0 %v1574_v51, %s3598_s22 }
 0x1c1   : > { %1289 = vrot.lane.b32.xlu1 %v1526_v57, %s3598_s22 }
 0x1c4   : > { %1385 = vrot.lane.b32.xlu0 %v1478_v54, %s2725_s20 }
 0x1c5   : > { %1338 = vrot.lane.b32.xlu1 %v1574_v51, %s2724_s18 }
 0x1c8   : > { %1499 = vrot.lane.b32.xlu0 %v1479_v1, %s2724_s18 }
 0x1c9   : > { %1452 = vrot.lane.b32.xlu1 %v1431_v2, %s3598_s22 }
 0x1cc   : > { %1547 = vrot.lane.b32.xlu0 %v1527_v25, %s2725_s20 }
 0x1cd   : > { %1387 = vrot.lane.b32.xlu1 %v1479_v1, %s2725_s20 }
 0x1d0   : > { %1291 = vrot.lane.b32.xlu0 %v1527_v25, %s3598_s22 }
 0x1d1   : > { %1501 = vrot.lane.b32.xlu1 %v1480_v55, %s2724_s18 }
 0x1d4   : > { %1340 = vrot.lane.b32.xlu0 %v1431_v2, %s2724_s18 }
 0x1d5   : > { %1549 = vrot.lane.b32.xlu1 %v1528_v60, %s2725_s20 }
 0x1d8   : > { %1454 = vrot.lane.b32.xlu0 %v1432_v37, %s3598_s22 }
 0x1d9   : > { %1293 = vrot.lane.b32.xlu1 %v1528_v60, %s3598_s22 }
 0x1dc   : > { %1503 = vrot.lane.b32.xlu0 %v1481_v4, %s2724_s18 }
 0x1dd   : > { %1342 = vrot.lane.b32.xlu1 %v1432_v37, %s2724_s18 }
 0x1e0   : > { %1551 = vrot.lane.b32.xlu0 %v1529_v56, %s2725_s20 }
 0x1e1   : > { %1456 = vrot.lane.b32.xlu1 %v1433_v49, %s3598_s22  ;;  %s2656_s22 = scalar_lea.vmem %s3516_s19, 1024 }
 0x1e2   : > { %p2657_p11 = scmp.ne.s32.totalorder %s3516_s19, %s2656_s22 }
 0x1e4   : > { %1389 = vrot.lane.b32.xlu0 %v1480_v55, %s2725_s20  ;;  %p2658_p12 = pnand %p2657_p11, %p2847_p5 }
 0x1e5   : > { %1391 = vrot.lane.b32.xlu1 %v1481_v4, %s2725_s20  ;;  %s3514_s20 = scalar_lea.hbm %s3583_s14, %s2452_s26 }
 0x1e6   : > { %p2659_p13 = pneg %p2658_p12 }
 0x202   : > { %v1443_v7 = vpop.permute.xlu0 %1442 }
 0x203   : > { %v1282_v8 = vpop.permute.xlu1 %1281  ;;  %1466 = vst.msk [vmem:[#allocation4 + $0x8] sm:$0xff] %vm1303_vm13, %v1443_v7 }
 0x204   : > { %1305 = vst.msk [vmem:[#allocation4 + $0x18] sm:$0xff] %vm1303_vm13, %v1282_v8 }
 0x206   : > { %v1378_v9 = vpop.permute.xlu0 %1377 }
 0x207   : > { %v1331_v47 = vpop.permute.xlu1 %1330  ;;  %1402 = vst.msk [vmem:[#allocation4] sm:$0xff] %vm1401_vm15, %v1378_v9 }
 0x208   : > { %1354 = vst.msk [vmem:[#allocation4 + $0x18] sm:$0xff] %vm1352_vm14, %v1331_v47 }
 0x20a   : > { %v1492_v52 = vpop.permute.xlu0 %1491 }
 0x20b   : > { %v1445_v10 = vpop.permute.xlu1 %1444  ;;  %1515 = vst.msk [vmem:[#allocation4 + $0x8] sm:$0xff] %vm1352_vm14, %v1492_v52 }
 0x20c   : > { %1467 = vst.msk [vmem:[#allocation4 + $0x20] sm:$0xff] %vm1303_vm13, %v1445_v10 }
 0x20e   : > { %v1540_v11 = vpop.permute.xlu0 %1539  ;;  %v1587_v27 = vld [vmem:[#allocation4] sm:$0xff] }
 0x20f   : > { %v1380_v12 = vpop.permute.xlu1 %1379  ;;  %1563 = vst.msk [vmem:[#allocation4 + $0x8] sm:$0xff] %vm1401_vm15, %v1540_v11  ;;  %v1592_v11 = vld [vmem:[#allocation4 + $0x28] sm:$0xff] }
 0x210   : > { %1403 = vst.msk [vmem:[#allocation4 + $0x18] sm:$0xff] %vm1401_vm15, %v1380_v12 }
 0x212   : > { %v1284_v14 = vpop.permute.xlu0 %1283 }
 0x213   : > { %v1494_v15 = vpop.permute.xlu1 %1493  ;;  %1306 = vst.msk [vmem:[#allocation4 + $0x30] sm:$0xff] %vm1303_vm13, %v1284_v14 }
 0x214   : > { %1516 = vst.msk [vmem:[#allocation4 + $0x20] sm:$0xff] %vm1352_vm14, %v1494_v15 }
 0x216   : > { %v1333_v17 = vpop.permute.xlu0 %1332  ;;  %v1588_v23 = vld [vmem:[#allocation4 + $0x8] sm:$0xff] }
 0x217   : > { %v1542_v18 = vpop.permute.xlu1 %1541  ;;  %1355 = vst.msk [vmem:[#allocation4 + $0x30] sm:$0xff] %vm1352_vm14, %v1333_v17  ;;  %v1590_v20 = vld [vmem:[#allocation4 + $0x18] sm:$0xff]  ;;  %v1589_v17 = vld [vmem:[#allocation4 + $0x10] sm:$0xff] }
 0x218   : > { %1564 = vst.msk [vmem:[#allocation4 + $0x20] sm:$0xff] %vm1401_vm15, %v1542_v18  ;;  %v1611_v28 = vpack.c.bf16 %v1590_v20, %v1587_v27  ;;  %v1613_v18 = vpack.c.bf16 %v1592_v11, %v1589_v17  ;;  %v2078_v27 = vld [vmem:[%s3579_s10 + $0x8] sm:$0xff] }
 0x21a   : > { %v1447_v0 = vpop.permute.xlu0 %1446 }
 0x21b   : > { %v1286_v19 = vpop.permute.xlu1 %1285  ;;  %1468 = vst.msk [vmem:[#allocation4 + $0x38] sm:$0xff] %vm1303_vm13, %v1447_v0  ;;  %v1604_v0 = vld [vmem:[#allocation4 + $0x88] sm:$0xff] }
 0x21c   : > { %1307 = vst.msk [vmem:[#allocation4 + $0x48] sm:$0xff] %vm1303_vm13, %v1286_v19  ;;  %v1595_v19 = vld [vmem:[#allocation4 + $0x40] sm:$0xff] }
 0x21e   : > { %v1382_v21 = vpop.permute.xlu0 %1381 }
 0x21f   : > { %v1335_v22 = vpop.permute.xlu1 %1334  ;;  %v1591_v24 = vld [vmem:[#allocation4 + $0x20] sm:$0xff]  ;;  %1404 = vst.msk [vmem:[#allocation4 + $0x30] sm:$0xff] %vm1401_vm15, %v1382_v21 }
 0x220   : > { %1356 = vst.msk [vmem:[#allocation4 + $0x48] sm:$0xff] %vm1352_vm14, %v1335_v22  ;;  %v1612_v26 = vpack.c.bf16 %v1591_v24, %v1588_v23  ;;  %v1607_v22 = vld [vmem:[#allocation4 + $0xa0] sm:$0xff]  ;;  %v1610_v23 = vld [vmem:[#allocation4 + $0xb8] sm:$0xff] }
 0x221   : > { %v1622_v24 = vpack.c.bf16 %v1610_v23, %v1607_v22 }
 0x222   : > { %1811 = vmatprep.mubr.bf16.mxu1 %v1612_v26  ;;  %v1496_v30 = vpop.permute.xlu0 %1495  ;;  %v2077_v26 = vld [vmem:[%s3579_s10] sm:$0xff] }
 0x223   : > { %1812 = vmatmul.mubr.bf16.vlgmr.msra.gmra.mrb[0].mxu1 %v1611_v28  ;;  %v1449_v33 = vpop.permute.xlu1 %1448  ;;  %1517 = vst.msk [vmem:[#allocation4 + $0x38] sm:$0xff] %vm1352_vm14, %v1496_v30  ;;  %v2550_v28 = vpack.c.bf16 %v2078_v27, %v2077_v26  ;;  %v2079_v30 = vld [vmem:[%s3579_s10 + $0x10] sm:$0xff] }
 0x224   : > { %1469 = vst.msk [vmem:[#allocation4 + $0x50] sm:$0xff] %vm1303_vm13, %v1449_v33  ;;  %2512 = vmatpush3.bf16.msra.mxu1 %v3342_v31  ;;  %v2080_v33 = vld [vmem:[%s3579_s10 + $0x18] sm:$0xff] }
 0x225   : > { %2513 = vmatprep.subr.bf16.mxu1 %v2648_v29 }
 0x226   : > { %v1544_v32 = vpop.permute.xlu0 %1543  ;;  %v1593_v48 = vld [vmem:[#allocation4 + $0x30] sm:$0xff] }
 0x227   : > { %v1384_v34 = vpop.permute.xlu1 %1383  ;;  %1565 = vst.msk [vmem:[#allocation4 + $0x38] sm:$0xff] %vm1401_vm15, %v1544_v32  ;;  %v2553_v32 = vpack.c.bf16 %v2080_v33, %v2079_v30 }
 0x228   : > { %1405 = vst.msk [vmem:[#allocation4 + $0x48] sm:$0xff] %vm1401_vm15, %v1384_v34  ;;  %2514 = vmatpush3.bf16.msra.mxu1 %v2648_v29  ;;  %v2729_v29 = vmov 0.0|0.0   ;;  %v2649_v34 = vld [vmem:[%s3576_s7] sm:$0xff]  }
 0x229   : > { %2549 = vmatprep.subr.bf16.mxu1 %v2729_v29  ;;  %2523 = vmatprep.subr.bf16.mxu0 %v2649_v34 }
 0x22a   : > { %v1288_v35 = vpop.permute.xlu0 %1287  ;;  %2524 = vmatpush3.bf16.msra.mxu0 %v2649_v34 }
 0x22b   : > { %v1498_v36 = vpop.permute.xlu1 %1497  ;;  %1308 = vst.msk [vmem:[#allocation4 + $0x60] sm:$0xff] %vm1303_vm13, %v1288_v35  ;;  %2544 = vmatprep.subr.mxu0 %v2728_v41  ;;  %v2156_v35 = vld [vmem:[%s3581_s12] sm:$0x3] }
 0x22c   : > { %1518 = vst.msk [vmem:[#allocation4 + $0x50] sm:$0xff] %vm1352_vm14, %v1498_v36  ;;  %v2654_v36 = vld [vmem:[%s2869_s15 + $0xe8] ss:$8 sps:$4 sm:$0xff]  }
 0x22d   : > { %2526 = vmatmul.mubr.msk.bf16.vlgmr.msra.gmra.mrb[16].mxu0 %vm547_vm2, %v2654_v36 }
 0x22e   : > { %v1337_v38 = vpop.permute.xlu0 %1336  ;;  %v1594_v46 = vld [vmem:[#allocation4 + $0x38] sm:$0xff]  ;;  %2545 = vmatpush3.msk.msra.mxu0 %vm2162_vm1, %v2156_v35 }
 0x22f   : > { %v1546_v39 = vpop.permute.xlu1 %1545  ;;  %1357 = vst.msk [vmem:[#allocation4 + $0x60] sm:$0xff] %vm1352_vm14, %v1337_v38  ;;  %v1596_v43 = vld [vmem:[#allocation4 + $0x48] sm:$0xff]  ;;  %v2655_v38 = vld [vmem:[%s2869_s15 + $0xf8] ss:$8 sps:$4 sm:$0xff]   ;;  %s2731_s15 = smov [#allocation5]  }
 0x230   : > { %1566 = vst.msk [vmem:[#allocation4 + $0x50] sm:$0xff] %vm1401_vm15, %v1546_v39  ;;  %v1614_v54 = vpack.c.bf16 %v1596_v43, %v1593_v48  ;;  %2529 = vmatprep.mubr.msk.bf16.mxu0 %vm547_vm2, %v2655_v38  ;;  %s2660_s21 = sshll.u32 %s2731_s15, 4  ;;  %s2661_s21 = int_to_ptr.vmem [resolvable:$false] %s2660_s21 }
 0x231   : > { %s2662_s25 = scalar_lea.vmem %s2661_s21, 2048  ;;  %p2663_p0 = scmp.lt.s32.totalorder %s3516_s19, %s2661_s21 }
 0x232   : > { %v1451_v16 = vpop.permute.xlu0 %1450  ;;  %p2664_p1 = scmp.lt.s32.totalorder %s2662_s25, %s2656_s22 }
 0x233   : > { %v1290_v42 = vpop.permute.xlu1 %1289  ;;  %1470 = vst.msk [vmem:[#allocation4 + $0x68] sm:$0xff] %vm1303_vm13, %v1451_v16 }
 0x234   : > { %1309 = vst.msk [vmem:[#allocation4 + $0x78] sm:$0xff] %vm1303_vm13, %v1290_v42  ;;  %p2665_p2 = por %p2664_p1, %p2663_p0 }
 0x235   : > { %2530 = vmatmul.mubr.msk.bf16.gmra.mrb[20].mxu0 %vm547_vm2, %v3102_v5  ;;  %vm2158_vm2 = vcmask 15360  }
 0x236   : > { %v1386_v44 = vpop.permute.xlu0 %1385  ;;  %2546 = vmatprep.mubr.msk.f32.mxu0 %vm2730_vm0, %v2728_v41  ;;  %p2666_p3 = pnand %p2665_p2, %p2659_p13 }
 0x237   : > { %v1339_v45 = vpop.permute.xlu1 %1338  ;;  %v1597_v50 = vld [vmem:[#allocation4 + $0x50] sm:$0xff]  ;;  %1406 = vst.msk [vmem:[#allocation4 + $0x60] sm:$0xff] %vm1401_vm15, %v1386_v44 }
 0x238   : > { %1358 = vst.msk [vmem:[#allocation4 + $0x78] sm:$0xff] %vm1352_vm14, %v1339_v45  ;;  %v1615_v51 = vpack.c.bf16 %v1597_v50, %v1594_v46 }
 0x23a   : > { %1819 = vmatprep.mubr.bf16.mxu1 %v1615_v51  ;;  %v1500_v57 = vpop.permute.xlu0 %1499 }
 0x23b   : > { %1820 = vmatmul.mubr.bf16.gmra.mrb[4].mxu1 %v1614_v54  ;;  %v1453_v58 = vpop.permute.xlu1 %1452  ;;  %1519 = vst.msk [vmem:[#allocation4 + $0x68] sm:$0xff] %vm1352_vm14, %v1500_v57 }
 0x23c   : > { %1471 = vst.msk [vmem:[#allocation4 + $0x80] sm:$0xff] %vm1303_vm13, %v1453_v58 }
 0x23e   : > { %v1548_v62 = vpop.permute.xlu0 %1547  ;;  %v1599_v49 = vld [vmem:[#allocation4 + $0x60] sm:$0xff] }
 0x23f   : > { %v1388_v59 = vpop.permute.xlu1 %1387  ;;  %1567 = vst.msk [vmem:[#allocation4 + $0x68] sm:$0xff] %vm1401_vm15, %v1548_v62 }
 0x240   : > { %1407 = vst.msk [vmem:[#allocation4 + $0x78] sm:$0xff] %vm1401_vm15, %v1388_v59 }
 0x242   : > { %v1292_v61 = vpop.permute.xlu0 %1291 }
 0x243   : > { %v1502_v63 = vpop.permute.xlu1 %1501  ;;  %1310 = vst.msk [vmem:[#allocation4 + $0x90] sm:$0xff] %vm1303_vm13, %v1292_v61 }
 0x244   : > { %1520 = vst.msk [vmem:[#allocation4 + $0x80] sm:$0xff] %vm1352_vm14, %v1502_v63 }
 0x246   : > { %v1341_v1 = vpop.permute.xlu0 %1340  ;;  %v1600_v60 = vld [vmem:[#allocation4 + $0x68] sm:$0xff] }
 0x247   : > { %v1550_v2 = vpop.permute.xlu1 %1549  ;;  %1359 = vst.msk [vmem:[#allocation4 + $0x90] sm:$0xff] %vm1352_vm14, %v1341_v1  ;;  %v1602_v3 = vld [vmem:[#allocation4 + $0x78] sm:$0xff] }
 0x248   : > { %1568 = vst.msk [vmem:[#allocation4 + $0x80] sm:$0xff] %vm1401_vm15, %v1550_v2  ;;  %v1617_v31 = vpack.c.bf16 %v1602_v3, %v1599_v49 }
 0x24a   : > { %v1455_v25 = vpop.permute.xlu0 %1454 }
 0x24b   : > { %v1294_v13 = vpop.permute.xlu1 %1293  ;;  %1472 = vst.msk [vmem:[#allocation4 + $0x98] sm:$0xff] %vm1303_vm13, %v1455_v25 }
 0x24c   : > { %1311 = vst.msk [vmem:[#allocation4 + $0xa8] sm:$0xff] %vm1303_vm13, %v1294_v13 }
 0x24e   : > { %v1504_v55 = vpop.permute.xlu0 %1503 }
 0x24f   : > { %v1343_v53 = vpop.permute.xlu1 %1342  ;;  %v1603_v37 = vld [vmem:[#allocation4 + $0x80] sm:$0xff]  ;;  %1521 = vst.msk [vmem:[#allocation4 + $0x98] sm:$0xff] %vm1352_vm14, %v1504_v55 }
 0x250   : > { %1360 = vst.msk [vmem:[#allocation4 + $0xa8] sm:$0xff] %vm1352_vm14, %v1343_v53  ;;  %v1618_v56 = vpack.c.bf16 %v1603_v37, %v1600_v60  ;;  %v2434_v60 = vld [vmem:[%s3574_s5] ss:$0 sm:$0xff] }
 0x252   : > { %1827 = vmatprep.mubr.bf16.mxu1 %v1618_v56  ;;  %v1552_v4 = vpop.permute.xlu0 %1551 }
 0x253   : > { %1828 = vmatmul.mubr.bf16.gmra.mrb[8].mxu1 %v1617_v31  ;;  %v1457_v7 = vpop.permute.xlu1 %1456  ;;  %1569 = vst.msk [vmem:[#allocation4 + $0x98] sm:$0xff] %vm1401_vm15, %v1552_v4  ;;  %v2435_v31 = vld [vmem:[%s3575_s6] ss:$0 sm:$0xff] }
 0x254   : > { %1473 = vst.msk [vmem:[#allocation4 + $0xb0] sm:$0xff] %vm1303_vm13, %v1457_v7 }
 0x255   : > { %1522 = vst.msk [vmem:[#allocation4 + $0xb0] sm:$0xff] %vm1352_vm14, %v3361_v6  ;;  %v1598_v6 = vld [vmem:[#allocation4 + $0x58] sm:$0xff] }
 0x256   : > { %1570 = vst.msk [vmem:[#allocation4 + $0xb0] sm:$0xff] %vm1401_vm15, %v3363_v40  ;;  %v1390_v8 = vpop.permute.xlu0 %1389  ;;  %v1601_v40 = vld [vmem:[#allocation4 + $0x70] sm:$0xff]  ;;  %v1616_v20 = vpack.c.bf16 %v1598_v6, %v1595_v19 }
 0x257   : > { %v1392_v9 = vpop.permute.xlu1 %1391  ;;  %1408 = vst.msk [vmem:[#allocation4 + $0x90] sm:$0xff] %vm1401_vm15, %v1390_v8  ;;  %v1619_v21 = vpack.c.bf16 %v1604_v0, %v1601_v40 }
 0x258   : > { %1409 = vst.msk [vmem:[#allocation4 + $0xa8] sm:$0xff] %vm1401_vm15, %v1392_v9 }
 0x25a   : > { %v1606_v47 = vld [vmem:[#allocation4 + $0x98] sm:$0xff] }
 0x25d   : > { %v1609_v52 = vld [vmem:[#allocation4 + $0xb0] sm:$0xff] }
 0x25e   : > { %v1621_v10 = vpack.c.bf16 %v1609_v52, %v1606_v47  ;;  %v1605_v12 = vld [vmem:[#allocation4 + $0x90] sm:$0xff] }
 0x25f   : > { %v1608_v14 = vld [vmem:[#allocation4 + $0xa8] sm:$0xff] }
 0x260   : > { %1835 = vmatprep.mubr.bf16.mxu1 %v1621_v10  ;;  %v1620_v15 = vpack.c.bf16 %v1608_v14, %v1605_v12 }
 0x262   : > { %1836 = vmatmul.mubr.bf16.gmra.mrb[12].mxu1 %v1620_v15 }
 0x263   : > { %2515 = vmatprep.mubr.msk.bf16.mxu1 %vm1216_vm11, %v1613_v18 }
 0x26a   : > { %2516 = vmatmul.mubr.msk.bf16.vlgmr.msra.gmra.mrb[16].mxu1 %vm1216_vm11, %v1616_v20 }
 0x26b   : > { %2519 = vmatprep.mubr.msk.bf16.mxu1 %vm1216_vm11, %v1619_v21  ;;  %2551 = vmatpush3.bf16.msra.mxu1 %v2550_v28 }
 0x26c   : > { %2552 = vmatprep.subr.bf16.mxu1 %v2729_v29 }
 0x26f   : > { %2554 = vmatpush3.bf16.msra.mxu1 %v2553_v32 }
 0x272   : > { %2520 = vmatmul.mubr.msk.bf16.gmra.mrb[20].mxu1 %vm1216_vm11, %v1622_v24 }
 0x273   : > { %2541 = vmatprep.mubr.msk.f32.mxu1 %vm2730_vm0, %v2728_v41 }
 0x2f6   : > { %v2469_v39 = vpop.f32.mrb[0].mxu1 }
 0x2f7   : > { %v2470_v16 = vpop.f32.mrb[1].mxu1 }
 0x2f8   : > { %v2471_v42 = vadd.f32 %v2470_v16, %v2469_v39  ;;  %v2472_v43 = vpop.f32.mrb[2].mxu1 }
 0x2f9   : > { %v2473_v44 = vpop.f32.mrb[3].mxu1 }
 0x2fa   : > { %v2474_v45 = vadd.f32 %v2473_v44, %v2472_v43 }
 0x30e   : > { %v2475_v46 = vpop.f32.mrb[4].mxu1 }
 0x30f   : > { %v2476_v50 = vpop.f32.mrb[5].mxu1 }
 0x310   : > { %v2477_v51 = vadd.f32 %v2476_v50, %v2475_v46  ;;  %v2478_v48 = vpop.f32.mrb[6].mxu1 }
 0x311   : > { %v2479_v54 = vpop.f32.mrb[7].mxu1 }
 0x312   : > { %v2480_v57 = vadd.f32 %v2479_v54, %v2478_v48 }
 0x326   : > { %v2481_v58 = vpop.f32.mrb[8].mxu1 }
 0x327   : > { %v2482_v62 = vpop.f32.mrb[9].mxu1 }
 0x328   : > { %v2483_v59 = vadd.f32 %v2482_v62, %v2481_v58  ;;  %v2484_v61 = vpop.f32.mrb[10].mxu1 }
 0x329   : > { %v2485_v63 = vpop.f32.mrb[11].mxu1 }
 0x32a   : > { %v2486_v5 = vadd.f32 %v2485_v63, %v2484_v61  ;;  %v2527_v63 = vpop.f32.mrb[16].mxu0 }
 0x335   : > { %v2487_v1 = vpop.f32.mrb[12].mxu1 }
 0x336   : > { %v2488_v41 = vpop.f32.mrb[13].mxu1 }
 0x337   : > { %v2489_v2 = vadd.f32 %v2488_v41, %v2487_v1  ;;  %v2490_v25 = vpop.f32.mrb[14].mxu1 }
 0x338   : > { %v2491_v13 = vpop.f32.mrb[15].mxu1 }
 0x339   : > { %v2492_v3 = vadd.f32 %v2491_v13, %v2490_v25 }
 0x33d   : > { %v2517_v53 = vpop.f32.mrb[16].mxu1 }
 0x33e   : > { %v1887_v55 = vadd.f32 %v2517_v53, %v2477_v51  ;;  %v1878_v37 = vpop.f32.mrb[17].mxu1  ;;  %v2081_v53 = vld [vmem:[%s3580_s11] sm:$0x1] }
 0x33f   : > { %v1879_v56 = vadd.f32 %v2471_v42, %v1878_v37  ;;  %v2518_v49 = vpop.f32.mrb[18].mxu1 }
 0x340   : > { %v1890_v4 = vadd.f32 %v2518_v49, %v2480_v57  ;;  %v1881_v7 = vpop.f32.mrb[19].mxu1  ;;  %v1918_v8 = vmul.f32 %v2434_v60, %v1887_v55  ;;  %v2157_v49 = vld [vmem:[%s3582_s13] sm:$0x1] }
 0x341   : > { %v1916_v9 = vmul.f32 %v2434_v60, %v1879_v56  ;;  %v1882_v47 = vadd.f32 %v2474_v45, %v1881_v7 }
 0x342   : > { %v1919_v10 = vmul.f32 %v2434_v60, %v1890_v4  ;;  %v3456_v12 = vadd.f32 %v2435_v31, %v1918_v8 }
 0x343   : > { %v3454_v52 = vadd.f32 %v2435_v31, %v1916_v9  ;;  %v1917_v11 = vmul.f32 %v2434_v60, %v1882_v47 }
 0x344   : > { %v3462_v40 = vadd.f32 %v2435_v31, %v1919_v10  ;;  %v2057_v24 = vsel %vm1216_vm11, %v3456_v12, 0.0  ;;  %v2242_v10 = vlaneseq }
 0x345   : > { %v3458_v14 = vadd.f32 %v2435_v31, %v1917_v11  ;;  %v2521_v15 = vpop.f32.mrb[20].mxu1  ;;  %v2054_v6 = vsel %vm1216_vm11, %v3454_v52, 0.0  ;;  %v2441_v11 = vld [vmem:[%s3577_s8] ss:$0 sm:$0xff] }
 0x346   : > { %v1903_v17 = vadd.f32 %v2521_v15, %v2489_v2  ;;  %v1894_v18 = vpop.f32.mrb[21].mxu1  ;;  %v2059_v30 = vsel %vm1216_vm11, %v3462_v40, 0.0  ;;  %v2243_v15 = vshrl.u32 %v2242_v10, 7 }
 0x347   : > { %v2055_v0 = vsel %vm1216_vm11, %v3458_v14, 0.0  ;;  %v1895_v19 = vadd.f32 %v2483_v59, %v1894_v18  ;;  %v2522_v20 = vpop.f32.mrb[22].mxu1  ;;  %v2442_v18 = vld [vmem:[%s3578_s9] ss:$0 sm:$0xff] }
 0x348   : > { %v2056_v21 = vadd.f32 %v2055_v0, %v2054_v6  ;;  %v1906_v22 = vadd.f32 %v2522_v20, %v2492_v3  ;;  %v1897_v23 = vpop.f32.mrb[23].mxu1  ;;  %v1922_v26 = vmul.f32 %v2434_v60, %v1903_v17  ;;  %v2033_v17 = vmul.f32 %v2527_v63, %v2441_v11 }
 0x349   : > { %v1920_v27 = vmul.f32 %v2434_v60, %v1895_v19  ;;  %v1898_v28 = vadd.f32 %v2486_v5, %v1897_v23  ;;  %v1993_v5 = vpop.f32.mrb[17].mxu0  ;;  %v2244_v20 = vsub.s32 0, %v2243_v15 }
 0x34a   : > { %v2058_v29 = vadd.f32 %v2057_v24, %v2056_v21  ;;  %v1923_v32 = vmul.f32 %v2434_v60, %v1906_v22  ;;  %v3472_v36 = vadd.f32 %v2435_v31, %v1922_v26  ;;  %v2528_v1 = vpop.f32.mrb[18].mxu0  ;;  %v2031_v6 = vmul.f32 %v2441_v11, %v1993_v5 }
 0x34b   : > { %v3470_v33 = vadd.f32 %v2435_v31, %v1920_v27  ;;  %v1921_v34 = vmul.f32 %v2434_v60, %v1898_v28  ;;  %v1996_v41 = vpop.f32.mrb[19].mxu0  ;;  %v2034_v0 = vmul.f32 %v2528_v1, %v2441_v11  ;;  %v2048_v27 = vadd.f32 %v2442_v18, %v2033_v17 }
 0x34c   : > { %v2060_v35 = vadd.f32 %v2059_v30, %v2058_v29  ;;  %v3478_v42 = vadd.f32 %v2435_v31, %v1923_v32  ;;  %v2065_v45 = vsel %vm1216_vm11, %v3472_v36, 0.0  ;;  %v2531_v2 = vpop.f32.mrb[20].mxu0  ;;  %v2032_v19 = vmul.f32 %v2441_v11, %v1996_v41 }
 0x34d   : > { %v2061_v38 = vsel %vm1216_vm11, %v3470_v33, 0.0  ;;  %v3476_v39 = vadd.f32 %v2435_v31, %v1921_v34  ;;  %v2009_v25 = vpop.f32.mrb[21].mxu0  ;;  %v2037_v21 = vmul.f32 %v2531_v2, %v2441_v11  ;;  %v2046_v28 = vadd.f32 %v2442_v18, %v2031_v6 }
 0x34e   : > { %v2062_v16 = vadd.f32 %v2061_v38, %v2060_v35  ;;  %v2067_v50 = vsel %vm1216_vm11, %v3478_v42, 0.0  ;;  %v2532_v13 = vpop.f32.mrb[22].mxu0  ;;  %v2035_v22 = vmul.f32 %v2441_v11, %v2009_v25  ;;  %v2049_v29 = vadd.f32 %v2442_v18, %v2034_v0 }
 0x34f   : > { %v2063_v43 = vsel %vm1216_vm11, %v3476_v39, 0.0  ;;  %v2012_v3 = vpop.f32.mrb[23].mxu0  ;;  %v2038_v23 = vmul.f32 %v2532_v13, %v2441_v11  ;;  %v2047_v30 = vadd.f32 %v2442_v18, %v2032_v19  ;;  %v2052_v34 = vadd.f32 %v2442_v18, %v2037_v21 }
 0x350   : > { %v2064_v44 = vadd.f32 %v2063_v43, %v2062_v16  ;;  %v2036_v24 = vmul.f32 %v2441_v11, %v2012_v3  ;;  %v2050_v35 = vadd.f32 %v2442_v18, %v2035_v22 }
 0x351   : > { %v2053_v38 = vadd.f32 %v2442_v18, %v2038_v23 }
 0x352   : > { %v2066_v46 = vadd.f32 %v2065_v45, %v2064_v44  ;;  %v2051_v16 = vadd.f32 %v2442_v18, %v2036_v24 }
 0x354   : > { %v2068_v51 = vadd.f32 %v2067_v50, %v2066_v46 }
 0x356   : > { %v2069_v48 = vrot.slane %v2068_v51, 4 }
 0x358   : > { %v2070_v54 = vadd.f32 %v2069_v48, %v2068_v51 }
 0x35a   : > { %v2071_v57 = vrot.slane %v2070_v54, 2 }
 0x35c   : > { %v2072_v58 = vadd.f32 %v2071_v57, %v2070_v54 }
 0x35e   : > { %v2073_v62 = vrot.slane %v2072_v58, 1 }
 0x360   : > { %v2074_v59 = vadd.f32 %v2073_v62, %v2072_v58 }
 0x362   : > { %v2076_v61 = vmul.f32 0.015625, %v2074_v59 }
 0x364   : > { %2542 = vmatmul.mubr.msk.f32.vlgmr.msra.gmra.mrb[24].mxu1 %vm1216_vm11, %v2076_v61 }
 0x437   : > { %v2151_v55 = vpop.f32.mrb[24].mxu1 }
 0x438   : > { %v2152_v60 = vadd.f32 %v2151_v55, %v2081_v53  ;;  %v2543_v37 = vpop.f32.mrb[25].mxu1 }
 0x43a   : > { %v2155_v56 = vmax.f32 %v2152_v60, 0.0 }
 0x43c   : > { %2547 = vmatmul.mubr.msk.f32.vlgmr.msra.gmra.mrb[24].mxu0 %vm2158_vm2, %v2155_v56 }
 0x50f   : > { %v2232_v31 = vpop.f32.mrb[24].mxu0 }
 0x510   : > { %v2233_v4 = vadd.f32 %v2232_v31, %v2157_v49  ;;  %v2548_v7 = vpop.f32.mrb[25].mxu0 }
 0x512   : > { %v2446_v8 = vmul.f32 -1.442695, %v2233_v4 }
 0x514   : > { %2650 = vpow2.f32 %v2446_v8 }
 0x51e   : > { %v2651_v9 = vpop.eup %2650 }
 0x51f   : > { %v2239_v47 = vadd.f32 1.0, %v2651_v9 }
 0x521   : > { %2652 = vrcp.f32 %v2239_v47 }
 0x52b   : > { %v2653_v26 = vpop.eup %2652 }
 0x52c   : > { %v2245_v32 = vrot.slane %v2653_v26, %v2244_v20 }
 0x52e   : > { %v2246_v43 = vmul.f32 %v2245_v32, %v3454_v52  ;;  %v2247_v44 = vmul.f32 %v2245_v32, %v3458_v14  ;;  %v2248_v45 = vmul.f32 %v2245_v32, %v3456_v12  ;;  %v2249_v46 = vmul.f32 %v2245_v32, %v3462_v40 }
 0x52f   : > { %v2250_v50 = vmul.f32 %v2245_v32, %v3470_v33  ;;  %v2251_v51 = vmul.f32 %v2245_v32, %v3476_v39  ;;  %v2252_v48 = vmul.f32 %v2245_v32, %v3472_v36  ;;  %v2253_v54 = vmul.f32 %v2245_v32, %v3478_v42 }
 0x530   : > { %v2254_v57 = vadd.f32 %v2246_v43, %v2046_v28  ;;  %v2255_v58 = vadd.f32 %v2247_v44, %v2047_v30  ;;  %v2256_v52 = vadd.f32 %v2248_v45, %v2048_v27  ;;  %v2257_v62 = vadd.f32 %v2249_v46, %v2049_v29 }
 0x531   : > { %v2258_v14 = vadd.f32 %v2250_v50, %v2050_v35  ;;  %v2259_v59 = vadd.f32 %v2251_v51, %v2051_v16  ;;  %v2260_v12 = vadd.f32 %v2252_v48, %v2052_v34  ;;  %v2261_v61 = vadd.f32 %v2253_v54, %v2053_v38 }
 0x532   : > { %v2262_v40 = vmax.f32 %v2254_v57, 0.0  ;;  %v2263_v63 = vmax.f32 %v2255_v58, 0.0  ;;  %v2264_v33 = vmax.f32 %v2256_v52, 0.0  ;;  %v2265_v39 = vmax.f32 %v2257_v62, 0.0 }
 0x533   : > { %v2266_v36 = vmax.f32 %v2258_v14, 0.0  ;;  %v2267_v42 = vmax.f32 %v2259_v59, 0.0  ;;  %v2268_v5 = vmax.f32 %v2260_v12, 0.0  ;;  %v2269_v1 = vmax.f32 %v2261_v61, 0.0 }
 0x534   : > { %2270 = vst.msk [vmem:[%s463_s27] sm:$0xff] %vm1216_vm11, %v2262_v40  ;;  %2271 = vst.msk [vmem:[%s463_s27 + $0x8] sm:$0xff] %vm1216_vm11, %v2263_v63 }
 0x535   : > { %2272 = vst.msk [vmem:[%s463_s27 + $0x10] sm:$0xff] %vm1216_vm11, %v2264_v33  ;;  %2273 = vst.msk [vmem:[%s463_s27 + $0x18] sm:$0xff] %vm1216_vm11, %v2265_v39 }
 0x536   : > { %2274 = vst.msk [vmem:[%s463_s27 + $0x20] sm:$0xff] %vm1216_vm11, %v2266_v36  ;;  %2275 = vst.msk [vmem:[%s463_s27 + $0x28] sm:$0xff] %vm1216_vm11, %v2267_v42 }
 0x537   : > { %2276 = vst.msk [vmem:[%s463_s27 + $0x30] sm:$0xff] %vm1216_vm11, %v2268_v5  ;;  %2277 = vst.msk [vmem:[%s463_s27 + $0x38] sm:$0xff] %vm1216_vm11, %v2269_v1 }
 0x538   : > { %2669 = shalt.err (!%p2666_p3)
}
 0x539   : > { %s2670_s28 = scalar_lea.hbm %s3514_s20, 1024  ;;  %s2674_s24 = scalar_lea.hbm %s3583_s14, 2048 }
 0x53a   : > { %p2671_p4 = scmp.ne.s32.totalorder %s3514_s20, %s2670_s28  ;;  %p2675_p9 = scmp.lt.u32.totalorder %s3514_s20, %s3583_s14 }
 0x53b   : > { %p2676_p10 = scmp.lt.u32.totalorder %s2674_s24, %s2670_s28  ;;  %p2678_p12 = scmp.lt.u32.totalorder %s2670_s28, %s3514_s20 }
 0x53c   : > { %p2672_p7 = pnand %p2671_p4, %p2847_p5 }
 0x53d   : > { %p2677_p11 = por %p2676_p10, %p2675_p9 }
 0x53e   : > { %p2673_p8 = pneg %p2672_p7 }
 0x53f   : > { %p2679_p13 = por %p2678_p12, %p2677_p11 }
 0x541   : > { %p2680_p0 = pnand %p2679_p13, %p2673_p8 }
 0x543   : > { %2683 = shalt.err (!%p2680_p0)
}
 0x544   : > { %s2732_s22 = smov 128   ;;  %s2733_s21 = smov 8  }
 0x545   : > { %2556 = dma.vmem_to_hbm [thread:$0]  (%p2847_p5), %s3516_s19, 1024, %s3514_s20, %s3528_s17, %s2732_s22, %s2732_s22, %s2733_s21  }
 0x546 PF: > { %p2562_p1 = scmp.ge.s32.totalorder %s2718_s16, 2  ;;  %s2307_s26 = sand.u32 1, %s2706_s29  }
 0x547   : > { %s2308_s28 = scalar_lea.sflag [#allocation6], %s2307_s26 }
 0x548   : > { %p2559_p2 = pnand %p2562_p1, %p2851_p6 }
 0x54a   : > { %2701 = dma.done.wait (!%p2559_p2), %s2308_s28, 1024  }
 0x54b   : > { %2703 = vsyncadd (!%p2559_p2), %s2308_s28, 4294966272  ;;  %s3600_s16 = sld [smem:[#allocation9_spill]]  ;;  %s3601_s27 = sld [smem:[#allocation8_spill]] }
 0x54c   : > { %s3602_s15 = sld [smem:[#allocation10_spill]]  ;;  %s3603_s29 = smov %s2710_s30 }
 0x551   : > { %p24_p3 = scmp.ge.s32.totalorder %s3600_s16, 4   ;;  %s3604_s30 = smov %s3601_s27 }
 0x553   :  { %26 = sbr.rel (!%p24_p3) target bundleno = 3 (0x3), region = 113 }
 0x55a   :  { %2313 = vsyncpa [#allocation6], 1 }
 0x55b   :  { %2315 = vsyncpa [#allocation6 + $0x1], 1 }

</bundles_post_ra>
